<compile_context>
chip_gen: v6e
topology: v6e:2x2x1
jax: 0.10.0
libtpu: 0.0.40
codegen_flags: <defaults>
</compile_context>

<pallas_src>
import functools

import jax
import jax.numpy as jnp
from jax.experimental import pallas as pl
from jax.experimental.pallas import tpu as pltpu


# ------------------------------ Pallas kernel ------------------------------ #

def _se_basic_block_kernel(x_ref, w1_ref, b1_ref, w2_ref, b2_ref,
                           fc1_ref, fc2_ref, o_ref,
                           xpad1, col1, xpad2, col2,
                           *, H, W, Cin, Cmid, Cout):
    """Fused SEBasicBlock forward for one batch element.

    x_ref  : (1, H*W, Cin)   f32  input slab (also the residual)
    w1_ref : (9*Cin, Cmid)   bf16 conv1 weight, BN1 scale folded, im2col layout
    b1_ref : (1, Cmid)       f32  BN1 bias
    w2_ref : (9*Cmid, Cout)  bf16 conv2 weight, BN2 scale folded
    b2_ref : (1, Cout)       f32  BN2 bias
    fc1_ref: (Cr, Cout)      f32  SE fc1 weight (torch layout (Cr, C))
    fc2_ref: (Cr, Cout)      f32  SE fc2 weight transposed ((C, Cr) -> (Cr, C))
    o_ref  : (1, H*W, Cout)  f32  output slab
    xpad1  : VMEM (H+2, W+2, Cin)  f32 padded-input scratch (zero halo)
    col1   : VMEM (H*W, 9*Cin)     bf16 im2col scratch
    xpad2  : VMEM (H+2, W+2, Cmid) f32 padded-input scratch
    col2   : VMEM (H*W, 9*Cmid)    bf16 im2col scratch
    """
    x = x_ref[0]                                            # (H*W, Cin) f32

    # ---------------- conv1 + bn1 + relu ---------------- #
    xpad1[...] = jnp.zeros_like(xpad1)
    xpad1[1:H + 1, 1:W + 1, :] = x.reshape(H, W, Cin).astype(xpad1.dtype)
    for kh in range(3):
        for kw in range(3):
            t = kh * 3 + kw
            patch = xpad1[kh:kh + H, kw:kw + W, :]          # (H, W, Cin)
            col1[:, t * Cin:(t + 1) * Cin] = (
                patch.reshape(H * W, Cin).astype(col1.dtype))
    y1 = jnp.dot(col1[...], w1_ref[...],
                 preferred_element_type=jnp.float32)        # (H*W, Cmid), single MXU matmul
    y1 = jnp.maximum(y1 + b1_ref[...], 0.0)

    # ---------------- conv2 + bn2 ---------------- #
    xpad2[...] = jnp.zeros_like(xpad2)
    xpad2[1:H + 1, 1:W + 1, :] = y1.reshape(H, W, Cmid).astype(xpad2.dtype)
    for kh in range(3):
        for kw in range(3):
            t = kh * 3 + kw
            patch = xpad2[kh:kh + H, kw:kw + W, :]          # (H, W, Cmid)
            col2[:, t * Cmid:(t + 1) * Cmid] = (
                patch.reshape(H * W, Cmid).astype(col2.dtype))
    y2 = jnp.dot(col2[...], w2_ref[...],
                 preferred_element_type=jnp.float32)        # (H*W, Cout)
    y2 = y2 + b2_ref[...]

    # ---------- squeeze-and-excitation (VPU/XLU, no tiny M=1 MXU matmuls) ---- #
    m = jnp.mean(y2, axis=0, keepdims=True)                                   # (1, Cout)
    h = jnp.maximum(jnp.sum(fc1_ref[...] * m, axis=1, keepdims=True), 0.0)    # (Cr, 1)
    s = jax.nn.sigmoid(jnp.sum(fc2_ref[...] * h, axis=0, keepdims=True))      # (1, Cout)

    # ---------------- gate + residual + final relu ---------------- #
    y = jnp.maximum(y2 * s + x.astype(jnp.float32), 0.0)    # (H*W, Cout), Cin == Cout
    o_ref[0] = y.astype(o_ref.dtype)


# ------------------------------ JAX wrapper -------------------------------- #

def _fold_bn(gamma, beta, mean, var, eps=1e-5):
    scale = gamma / jnp.sqrt(var + eps)
    bias = beta - mean * scale
    return scale, bias


def se_basic_block_forward(x_nchw, params):
    """SEBasicBlock.forward (stride=1, downsample=None) via one fused Pallas kernel."""
    B, Cin, H, W = x_nchw.shape
    conv1_w = params["conv1_w"]          # (3, 3, Cin, Cmid)  HWIO
    conv2_w = params["conv2_w"]          # (3, 3, Cmid, Cout) HWIO
    Cmid = conv1_w.shape[-1]
    Cout = conv2_w.shape[-1]
    assert Cin == Cout, "stride=1 / downsample=None requires inplanes == planes"
    fc1_w = params["fc1_w"]              # (Cr, Cout)
    fc2_w_t = params["fc2_w_t"]          # (Cr, Cout)
    Cr = fc1_w.shape[0]

    # Fold BN scale into the conv weights (bias kept separate); cast MXU operands to bf16.
    s1, b1 = _fold_bn(*params["bn1"])
    s2, b2 = _fold_bn(*params["bn2"])
    w1 = (conv1_w * s1[None, None, None, :]).reshape(9 * Cin, Cmid).astype(jnp.bfloat16)
    w2 = (conv2_w * s2[None, None, None, :]).reshape(9 * Cmid, Cout).astype(jnp.bfloat16)

    # NCHW -> NHWC -> (B, H*W, C) slab (free row-major reshape).
    x = jnp.transpose(x_nchw, (0, 2, 3, 1)).reshape(B, H * W, Cin)

    kern = functools.partial(_se_basic_block_kernel,
                             H=H, W=W, Cin=Cin, Cmid=Cmid, Cout=Cout)
    out = pl.pallas_call(
        kern,
        out_shape=jax.ShapeDtypeStruct((B, H * W, Cout), x_nchw.dtype),
        grid=(B,),
        in_specs=[
            pl.BlockSpec((1, H * W, Cin), lambda b: (b, 0, 0)),
            pl.BlockSpec((9 * Cin, Cmid), lambda b: (0, 0)),
            pl.BlockSpec((1, Cmid), lambda b: (0, 0)),
            pl.BlockSpec((9 * Cmid, Cout), lambda b: (0, 0)),
            pl.BlockSpec((1, Cout), lambda b: (0, 0)),
            pl.BlockSpec((Cr, Cout), lambda b: (0, 0)),
            pl.BlockSpec((Cr, Cout), lambda b: (0, 0)),
        ],
        out_specs=pl.BlockSpec((1, H * W, Cout), lambda b: (b, 0, 0)),
        scratch_shapes=[
            pltpu.VMEM((H + 2, W + 2, Cin), jnp.float32),
            pltpu.VMEM((H * W, 9 * Cin), jnp.bfloat16),
            pltpu.VMEM((H + 2, W + 2, Cmid), jnp.float32),
            pltpu.VMEM((H * W, 9 * Cmid), jnp.bfloat16),
        ],
        compiler_params=pltpu.CompilerParams(
            dimension_semantics=("parallel",)),
    )(x, w1, b1.reshape(1, Cmid), w2, b2.reshape(1, Cout), fc1_w, fc2_w_t)

    return jnp.transpose(out.reshape(B, H, W, Cout), (0, 3, 1, 2))


def se_basic_block_reference(x_nchw, params):
    """Pure-JAX reference mirroring the kernel's bf16-matmul / f32-accumulate numerics."""
    x = jnp.transpose(x_nchw, (0, 2, 3, 1))                  # NHWC
    s1, b1 = _fold_bn(*params["bn1"])
    s2, b2 = _fold_bn(*params["bn2"])
    w1 = (params["conv1_w"] * s1[None, None, None, :]).astype(jnp.bfloat16)
    w2 = (params["conv2_w"] * s2[None, None, None, :]).astype(jnp.bfloat16)
    dn = ("NHWC", "HWIO", "NHWC")
    y1 = jax.lax.conv_general_dilated(
        x.astype(jnp.bfloat16), w1, (1, 1), "SAME", dimension_numbers=dn,
        preferred_element_type=jnp.float32)
    y1 = jnp.maximum(y1 + b1, 0.0)
    y2 = jax.lax.conv_general_dilated(
        y1.astype(jnp.bfloat16), w2, (1, 1), "SAME", dimension_numbers=dn,
        preferred_element_type=jnp.float32)
    y2 = y2 + b2
    m = jnp.mean(y2, axis=(1, 2))                            # (B, C)
    h = jnp.maximum(m @ params["fc1_w"].T, 0.0)              # (B, Cr)
    s = jax.nn.sigmoid(h @ params["fc2_w_t"])                # (B, C)
    y = jnp.maximum(y2 * s[:, None, None, :] + x, 0.0)
    return jnp.transpose(y, (0, 3, 1, 2))


def init_params(key, inplanes, planes, reduction=16):
    cr = max(planes // reduction, 1)
    ks = jax.random.split(key, 8)
    return {
        # conv weights in HWIO layout (kh, kw, Cin, Cout)
        "conv1_w": 0.1 * jax.random.normal(ks[0], (3, 3, inplanes, planes), jnp.float32),
        "conv2_w": 0.1 * jax.random.normal(ks[1], (3, 3, planes, planes), jnp.float32),
        # BatchNorm (gamma, beta, running_mean, running_var)
        "bn1": (1.0 + 0.1 * jax.random.normal(ks[2], (planes,), jnp.float32),
                0.1 * jax.random.normal(ks[3], (planes,), jnp.float32),
                0.05 * jax.random.normal(ks[4], (planes,), jnp.float32),
                1.0 + jax.nn.softplus(jax.random.normal(ks[5], (planes,), jnp.float32))),
        "bn2": (jnp.ones((planes,), jnp.float32),
                jnp.zeros((planes,), jnp.float32),
                jnp.zeros((planes,), jnp.float32),
                jnp.ones((planes,), jnp.float32)),
        # SE weights: fc1 in torch layout (Cr, C); fc2 pre-transposed (C, Cr) -> (Cr, C)
        "fc1_w": 0.2 * jax.random.normal(ks[6], (cr, planes), jnp.float32),
        "fc2_w_t": 0.2 * jax.random.normal(ks[7], (cr, planes), jnp.float32),
    }


if __name__ == "__main__":
    # planes must be >= reduction(=16) so planes // 16 >= 1.
    B, C, H, W = 2, 32, 8, 8
    key = jax.random.PRNGKey(0)
    kx, kp = jax.random.split(key)
    x = jax.random.normal(kx, (B, C, H, W), jnp.float32)
    params = init_params(kp, inplanes=C, planes=C, reduction=16)

    out = jax.jit(se_basic_block_forward)(x, params)
    out = jax.block_until_ready(out)

    ref = se_basic_block_reference(x, params)

    assert out.shape == (B, C, H, W)
    assert bool(jnp.all(jnp.isfinite(out)))
    assert bool(jnp.all(out >= 0.0))           # final ReLU
    max_err = float(jnp.max(jnp.abs(out - ref)))
    assert max_err < 5e-2, f"max abs error vs reference: {max_err}"
    print("KERNEL_OK")
</pallas_src>

<mosaic_0001>
module attributes {stable_mosaic.version = 11 : i64} {
  func.func @_se_basic_block_kernel(%arg0: i32, %arg1: memref<1x64x32xf32, #tpu.memory_space<vmem>>, %arg2: memref<288x32xbf16, #tpu.memory_space<vmem>>, %arg3: memref<1x32xf32, #tpu.memory_space<vmem>>, %arg4: memref<288x32xbf16, #tpu.memory_space<vmem>>, %arg5: memref<1x32xf32, #tpu.memory_space<vmem>>, %arg6: memref<2x32xf32, #tpu.memory_space<vmem>>, %arg7: memref<2x32xf32, #tpu.memory_space<vmem>>, %arg8: memref<1x64x32xf32, #tpu.memory_space<vmem>>, %arg9: memref<10x10x32xf32, #tpu.memory_space<vmem>>, %arg10: memref<64x288xbf16, #tpu.memory_space<vmem>>, %arg11: memref<10x10x32xf32, #tpu.memory_space<vmem>>, %arg12: memref<64x288xbf16, #tpu.memory_space<vmem>>) attributes {dimension_semantics = [#tpu.dimension_semantics<parallel>], iteration_bounds = array<i64: 2>, scalar_prefetch = 0 : i64, scratch_operands = 4 : i64, tpu.core_type = #tpu.core_type<tc>, window_params = [{transform_indices = @transform_0, window_bounds = array<i64: 1, 64, 32>}, {pipeline_mode = #tpu.pipeline_mode<synchronous>, transform_indices = @transform_1, window_bounds = array<i64: 288, 32>}, {pipeline_mode = #tpu.pipeline_mode<synchronous>, transform_indices = @transform_2, window_bounds = array<i64: 1, 32>}, {pipeline_mode = #tpu.pipeline_mode<synchronous>, transform_indices = @transform_3, window_bounds = array<i64: 288, 32>}, {pipeline_mode = #tpu.pipeline_mode<synchronous>, transform_indices = @transform_4, window_bounds = array<i64: 1, 32>}, {pipeline_mode = #tpu.pipeline_mode<synchronous>, transform_indices = @transform_5, window_bounds = array<i64: 2, 32>}, {pipeline_mode = #tpu.pipeline_mode<synchronous>, transform_indices = @transform_6, window_bounds = array<i64: 2, 32>}, {transform_indices = @transform_7, window_bounds = array<i64: 1, 64, 32>}]} {
    %c0 = arith.constant 0 : index
    %c0_0 = arith.constant 0 : index
    %c0_1 = arith.constant 0 : index
    %0 = vector.load %arg1[%c0, %c0_0, %c0_1] : memref<1x64x32xf32, #tpu.memory_space<vmem>>, vector<1x64x32xf32>
    %1 = vector.shape_cast %0 : vector<1x64x32xf32> to vector<64x32xf32>
    %cst = arith.constant 0.000000e+00 : f32
    %2 = vector.broadcast %cst : f32 to vector<10x10x32xf32>
    %c0_2 = arith.constant 0 : index
    %c0_3 = arith.constant 0 : index
    %c0_4 = arith.constant 0 : index
    %3 = vector.load %arg9[%c0_2, %c0_3, %c0_4] : memref<10x10x32xf32, #tpu.memory_space<vmem>>, vector<10x10x32xf32>
    tpu.vector_store %arg9[%c0_2, %c0_3, %c0_4], %2 {strides = array<i32>} : memref<10x10x32xf32, #tpu.memory_space<vmem>>, vector<10x10x32xf32>,
    %4 = vector.shape_cast %1 : vector<64x32xf32> to vector<8x8x32xf32>
    %c1 = arith.constant 1 : index
    %c1_5 = arith.constant 1 : index
    %c0_6 = arith.constant 0 : index
    %5 = vector.load %arg9[%c1, %c1_5, %c0_6] : memref<10x10x32xf32, #tpu.memory_space<vmem>>, vector<8x8x32xf32>
    tpu.vector_store %arg9[%c1, %c1_5, %c0_6], %4 {strides = array<i32>} : memref<10x10x32xf32, #tpu.memory_space<vmem>>, vector<8x8x32xf32>,
    %c0_7 = arith.constant 0 : index
    %c0_8 = arith.constant 0 : index
    %c0_9 = arith.constant 0 : index
    %6 = vector.load %arg9[%c0_7, %c0_8, %c0_9] : memref<10x10x32xf32, #tpu.memory_space<vmem>>, vector<8x8x32xf32>
    %7 = vector.shape_cast %6 : vector<8x8x32xf32> to vector<64x32xf32>
    %8 = arith.truncf %7 : vector<64x32xf32> to vector<64x32xbf16>
    %c0_10 = arith.constant 0 : index
    %c0_11 = arith.constant 0 : index
    %9 = vector.load %arg10[%c0_10, %c0_11] : memref<64x288xbf16, #tpu.memory_space<vmem>>, vector<64x32xbf16>
    tpu.vector_store %arg10[%c0_10, %c0_11], %8 {strides = array<i32>} : memref<64x288xbf16, #tpu.memory_space<vmem>>, vector<64x32xbf16>,
    %c0_12 = arith.constant 0 : index
    %c1_13 = arith.constant 1 : index
    %c0_14 = arith.constant 0 : index
    %10 = vector.load %arg9[%c0_12, %c1_13, %c0_14] : memref<10x10x32xf32, #tpu.memory_space<vmem>>, vector<8x8x32xf32>
    %11 = vector.shape_cast %10 : vector<8x8x32xf32> to vector<64x32xf32>
    %12 = arith.truncf %11 : vector<64x32xf32> to vector<64x32xbf16>
    %c0_15 = arith.constant 0 : index
    %c32 = arith.constant 32 : index
    %13 = vector.load %arg10[%c0_15, %c32] : memref<64x288xbf16, #tpu.memory_space<vmem>>, vector<64x32xbf16>
    tpu.vector_store %arg10[%c0_15, %c32], %12 {strides = array<i32>} : memref<64x288xbf16, #tpu.memory_space<vmem>>, vector<64x32xbf16>,
    %c0_16 = arith.constant 0 : index
    %c2 = arith.constant 2 : index
    %c0_17 = arith.constant 0 : index
    %14 = vector.load %arg9[%c0_16, %c2, %c0_17] : memref<10x10x32xf32, #tpu.memory_space<vmem>>, vector<8x8x32xf32>
    %15 = vector.shape_cast %14 : vector<8x8x32xf32> to vector<64x32xf32>
    %16 = arith.truncf %15 : vector<64x32xf32> to vector<64x32xbf16>
    %c0_18 = arith.constant 0 : index
    %c64 = arith.constant 64 : index
    %17 = vector.load %arg10[%c0_18, %c64] : memref<64x288xbf16, #tpu.memory_space<vmem>>, vector<64x32xbf16>
    tpu.vector_store %arg10[%c0_18, %c64], %16 {strides = array<i32>} : memref<64x288xbf16, #tpu.memory_space<vmem>>, vector<64x32xbf16>,
    %c1_19 = arith.constant 1 : index
    %c0_20 = arith.constant 0 : index
    %c0_21 = arith.constant 0 : index
    %18 = vector.load %arg9[%c1_19, %c0_20, %c0_21] : memref<10x10x32xf32, #tpu.memory_space<vmem>>, vector<8x8x32xf32>
    %19 = vector.shape_cast %18 : vector<8x8x32xf32> to vector<64x32xf32>
    %20 = arith.truncf %19 : vector<64x32xf32> to vector<64x32xbf16>
    %c0_22 = arith.constant 0 : index
    %c96 = arith.constant 96 : index
    %21 = vector.load %arg10[%c0_22, %c96] : memref<64x288xbf16, #tpu.memory_space<vmem>>, vector<64x32xbf16>
    tpu.vector_store %arg10[%c0_22, %c96], %20 {strides = array<i32>} : memref<64x288xbf16, #tpu.memory_space<vmem>>, vector<64x32xbf16>,
    %c1_23 = arith.constant 1 : index
    %c1_24 = arith.constant 1 : index
    %c0_25 = arith.constant 0 : index
    %22 = vector.load %arg9[%c1_23, %c1_24, %c0_25] : memref<10x10x32xf32, #tpu.memory_space<vmem>>, vector<8x8x32xf32>
    %23 = vector.shape_cast %22 : vector<8x8x32xf32> to vector<64x32xf32>
    %24 = arith.truncf %23 : vector<64x32xf32> to vector<64x32xbf16>
    %c0_26 = arith.constant 0 : index
    %c128 = arith.constant 128 : index
    %25 = vector.load %arg10[%c0_26, %c128] : memref<64x288xbf16, #tpu.memory_space<vmem>>, vector<64x32xbf16>
    tpu.vector_store %arg10[%c0_26, %c128], %24 {strides = array<i32>} : memref<64x288xbf16, #tpu.memory_space<vmem>>, vector<64x32xbf16>,
    %c1_27 = arith.constant 1 : index
    %c2_28 = arith.constant 2 : index
    %c0_29 = arith.constant 0 : index
    %26 = vector.load %arg9[%c1_27, %c2_28, %c0_29] : memref<10x10x32xf32, #tpu.memory_space<vmem>>, vector<8x8x32xf32>
    %27 = vector.shape_cast %26 : vector<8x8x32xf32> to vector<64x32xf32>
    %28 = arith.truncf %27 : vector<64x32xf32> to vector<64x32xbf16>
    %c0_30 = arith.constant 0 : index
    %c160 = arith.constant 160 : index
    %29 = vector.load %arg10[%c0_30, %c160] : memref<64x288xbf16, #tpu.memory_space<vmem>>, vector<64x32xbf16>
    tpu.vector_store %arg10[%c0_30, %c160], %28 {strides = array<i32>} : memref<64x288xbf16, #tpu.memory_space<vmem>>, vector<64x32xbf16>,
    %c2_31 = arith.constant 2 : index
    %c0_32 = arith.constant 0 : index
    %c0_33 = arith.constant 0 : index
    %30 = vector.load %arg9[%c2_31, %c0_32, %c0_33] : memref<10x10x32xf32, #tpu.memory_space<vmem>>, vector<8x8x32xf32>
    %31 = vector.shape_cast %30 : vector<8x8x32xf32> to vector<64x32xf32>
    %32 = arith.truncf %31 : vector<64x32xf32> to vector<64x32xbf16>
    %c0_34 = arith.constant 0 : index
    %c192 = arith.constant 192 : index
    %33 = vector.load %arg10[%c0_34, %c192] : memref<64x288xbf16, #tpu.memory_space<vmem>>, vector<64x32xbf16>
    tpu.vector_store %arg10[%c0_34, %c192], %32 {strides = array<i32>} : memref<64x288xbf16, #tpu.memory_space<vmem>>, vector<64x32xbf16>,
    %c2_35 = arith.constant 2 : index
    %c1_36 = arith.constant 1 : index
    %c0_37 = arith.constant 0 : index
    %34 = vector.load %arg9[%c2_35, %c1_36, %c0_37] : memref<10x10x32xf32, #tpu.memory_space<vmem>>, vector<8x8x32xf32>
    %35 = vector.shape_cast %34 : vector<8x8x32xf32> to vector<64x32xf32>
    %36 = arith.truncf %35 : vector<64x32xf32> to vector<64x32xbf16>
    %c0_38 = arith.constant 0 : index
    %c224 = arith.constant 224 : index
    %37 = vector.load %arg10[%c0_38, %c224] : memref<64x288xbf16, #tpu.memory_space<vmem>>, vector<64x32xbf16>
    tpu.vector_store %arg10[%c0_38, %c224], %36 {strides = array<i32>} : memref<64x288xbf16, #tpu.memory_space<vmem>>, vector<64x32xbf16>,
    %c2_39 = arith.constant 2 : index
    %c2_40 = arith.constant 2 : index
    %c0_41 = arith.constant 0 : index
    %38 = vector.load %arg9[%c2_39, %c2_40, %c0_41] : memref<10x10x32xf32, #tpu.memory_space<vmem>>, vector<8x8x32xf32>
    %39 = vector.shape_cast %38 : vector<8x8x32xf32> to vector<64x32xf32>
    %40 = arith.truncf %39 : vector<64x32xf32> to vector<64x32xbf16>
    %c0_42 = arith.constant 0 : index
    %c256 = arith.constant 256 : index
    %41 = vector.load %arg10[%c0_42, %c256] : memref<64x288xbf16, #tpu.memory_space<vmem>>, vector<64x32xbf16>
    tpu.vector_store %arg10[%c0_42, %c256], %40 {strides = array<i32>} : memref<64x288xbf16, #tpu.memory_space<vmem>>, vector<64x32xbf16>,
    %c0_43 = arith.constant 0 : index
    %c0_44 = arith.constant 0 : index
    %42 = vector.load %arg10[%c0_43, %c0_44] : memref<64x288xbf16, #tpu.memory_space<vmem>>, vector<64x288xbf16>
    %c0_45 = arith.constant 0 : index
    %c0_46 = arith.constant 0 : index
    %43 = vector.load %arg2[%c0_45, %c0_46] : memref<288x32xbf16, #tpu.memory_space<vmem>>, vector<288x32xbf16>
    %cst_47 = arith.constant dense<0.000000e+00> : vector<64x32xf32>
    %44 = tpu.matmul %42, %43, %cst_47 {dimension_numbers = #tpu.dot_dimension_numbers<[1], [0], [0], [1], [0, 0, 1, 1], [], []>} : vector<64x288xbf16>, vector<288x32xbf16>, vector<64x32xf32> -> vector<64x32xf32>
    %c0_48 = arith.constant 0 : index
    %c0_49 = arith.constant 0 : index
    %45 = vector.load %arg3[%c0_48, %c0_49] : memref<1x32xf32, #tpu.memory_space<vmem>>, vector<1x32xf32>
    %46 = vector.broadcast %45 : vector<1x32xf32> to vector<64x32xf32>
    %47 = arith.addf %44, %46 : vector<64x32xf32>
    %cst_50 = arith.constant 0.000000e+00 : f32
    %48 = vector.broadcast %cst_50 : f32 to vector<64x32xf32>
    %49 = arith.maximumf %47, %48 : vector<64x32xf32>
    %cst_51 = arith.constant 0.000000e+00 : f32
    %50 = vector.broadcast %cst_51 : f32 to vector<10x10x32xf32>
    %c0_52 = arith.constant 0 : index
    %c0_53 = arith.constant 0 : index
    %c0_54 = arith.constant 0 : index
    %51 = vector.load %arg11[%c0_52, %c0_53, %c0_54] : memref<10x10x32xf32, #tpu.memory_space<vmem>>, vector<10x10x32xf32>
    tpu.vector_store %arg11[%c0_52, %c0_53, %c0_54], %50 {strides = array<i32>} : memref<10x10x32xf32, #tpu.memory_space<vmem>>, vector<10x10x32xf32>,
    %52 = vector.shape_cast %49 : vector<64x32xf32> to vector<8x8x32xf32>
    %c1_55 = arith.constant 1 : index
    %c1_56 = arith.constant 1 : index
    %c0_57 = arith.constant 0 : index
    %53 = vector.load %arg11[%c1_55, %c1_56, %c0_57] : memref<10x10x32xf32, #tpu.memory_space<vmem>>, vector<8x8x32xf32>
    tpu.vector_store %arg11[%c1_55, %c1_56, %c0_57], %52 {strides = array<i32>} : memref<10x10x32xf32, #tpu.memory_space<vmem>>, vector<8x8x32xf32>,
    %c0_58 = arith.constant 0 : index
    %c0_59 = arith.constant 0 : index
    %c0_60 = arith.constant 0 : index
    %54 = vector.load %arg11[%c0_58, %c0_59, %c0_60] : memref<10x10x32xf32, #tpu.memory_space<vmem>>, vector<8x8x32xf32>
    %55 = vector.shape_cast %54 : vector<8x8x32xf32> to vector<64x32xf32>
    %56 = arith.truncf %55 : vector<64x32xf32> to vector<64x32xbf16>
    %c0_61 = arith.constant 0 : index
    %c0_62 = arith.constant 0 : index
    %57 = vector.load %arg12[%c0_61, %c0_62] : memref<64x288xbf16, #tpu.memory_space<vmem>>, vector<64x32xbf16>
    tpu.vector_store %arg12[%c0_61, %c0_62], %56 {strides = array<i32>} : memref<64x288xbf16, #tpu.memory_space<vmem>>, vector<64x32xbf16>,
    %c0_63 = arith.constant 0 : index
    %c1_64 = arith.constant 1 : index
    %c0_65 = arith.constant 0 : index
    %58 = vector.load %arg11[%c0_63, %c1_64, %c0_65] : memref<10x10x32xf32, #tpu.memory_space<vmem>>, vector<8x8x32xf32>
    %59 = vector.shape_cast %58 : vector<8x8x32xf32> to vector<64x32xf32>
    %60 = arith.truncf %59 : vector<64x32xf32> to vector<64x32xbf16>
    %c0_66 = arith.constant 0 : index
    %c32_67 = arith.constant 32 : index
    %61 = vector.load %arg12[%c0_66, %c32_67] : memref<64x288xbf16, #tpu.memory_space<vmem>>, vector<64x32xbf16>
    tpu.vector_store %arg12[%c0_66, %c32_67], %60 {strides = array<i32>} : memref<64x288xbf16, #tpu.memory_space<vmem>>, vector<64x32xbf16>,
    %c0_68 = arith.constant 0 : index
    %c2_69 = arith.constant 2 : index
    %c0_70 = arith.constant 0 : index
    %62 = vector.load %arg11[%c0_68, %c2_69, %c0_70] : memref<10x10x32xf32, #tpu.memory_space<vmem>>, vector<8x8x32xf32>
    %63 = vector.shape_cast %62 : vector<8x8x32xf32> to vector<64x32xf32>
    %64 = arith.truncf %63 : vector<64x32xf32> to vector<64x32xbf16>
    %c0_71 = arith.constant 0 : index
    %c64_72 = arith.constant 64 : index
    %65 = vector.load %arg12[%c0_71, %c64_72] : memref<64x288xbf16, #tpu.memory_space<vmem>>, vector<64x32xbf16>
    tpu.vector_store %arg12[%c0_71, %c64_72], %64 {strides = array<i32>} : memref<64x288xbf16, #tpu.memory_space<vmem>>, vector<64x32xbf16>,
    %c1_73 = arith.constant 1 : index
    %c0_74 = arith.constant 0 : index
    %c0_75 = arith.constant 0 : index
    %66 = vector.load %arg11[%c1_73, %c0_74, %c0_75] : memref<10x10x32xf32, #tpu.memory_space<vmem>>, vector<8x8x32xf32>
    %67 = vector.shape_cast %66 : vector<8x8x32xf32> to vector<64x32xf32>
    %68 = arith.truncf %67 : vector<64x32xf32> to vector<64x32xbf16>
    %c0_76 = arith.constant 0 : index
    %c96_77 = arith.constant 96 : index
    %69 = vector.load %arg12[%c0_76, %c96_77] : memref<64x288xbf16, #tpu.memory_space<vmem>>, vector<64x32xbf16>
    tpu.vector_store %arg12[%c0_76, %c96_77], %68 {strides = array<i32>} : memref<64x288xbf16, #tpu.memory_space<vmem>>, vector<64x32xbf16>,
    %c1_78 = arith.constant 1 : index
    %c1_79 = arith.constant 1 : index
    %c0_80 = arith.constant 0 : index
    %70 = vector.load %arg11[%c1_78, %c1_79, %c0_80] : memref<10x10x32xf32, #tpu.memory_space<vmem>>, vector<8x8x32xf32>
    %71 = vector.shape_cast %70 : vector<8x8x32xf32> to vector<64x32xf32>
    %72 = arith.truncf %71 : vector<64x32xf32> to vector<64x32xbf16>
    %c0_81 = arith.constant 0 : index
    %c128_82 = arith.constant 128 : index
    %73 = vector.load %arg12[%c0_81, %c128_82] : memref<64x288xbf16, #tpu.memory_space<vmem>>, vector<64x32xbf16>
    tpu.vector_store %arg12[%c0_81, %c128_82], %72 {strides = array<i32>} : memref<64x288xbf16, #tpu.memory_space<vmem>>, vector<64x32xbf16>,
    %c1_83 = arith.constant 1 : index
    %c2_84 = arith.constant 2 : index
    %c0_85 = arith.constant 0 : index
    %74 = vector.load %arg11[%c1_83, %c2_84, %c0_85] : memref<10x10x32xf32, #tpu.memory_space<vmem>>, vector<8x8x32xf32>
    %75 = vector.shape_cast %74 : vector<8x8x32xf32> to vector<64x32xf32>
    %76 = arith.truncf %75 : vector<64x32xf32> to vector<64x32xbf16>
    %c0_86 = arith.constant 0 : index
    %c160_87 = arith.constant 160 : index
    %77 = vector.load %arg12[%c0_86, %c160_87] : memref<64x288xbf16, #tpu.memory_space<vmem>>, vector<64x32xbf16>
    tpu.vector_store %arg12[%c0_86, %c160_87], %76 {strides = array<i32>} : memref<64x288xbf16, #tpu.memory_space<vmem>>, vector<64x32xbf16>,
    %c2_88 = arith.constant 2 : index
    %c0_89 = arith.constant 0 : index
    %c0_90 = arith.constant 0 : index
    %78 = vector.load %arg11[%c2_88, %c0_89, %c0_90] : memref<10x10x32xf32, #tpu.memory_space<vmem>>, vector<8x8x32xf32>
    %79 = vector.shape_cast %78 : vector<8x8x32xf32> to vector<64x32xf32>
    %80 = arith.truncf %79 : vector<64x32xf32> to vector<64x32xbf16>
    %c0_91 = arith.constant 0 : index
    %c192_92 = arith.constant 192 : index
    %81 = vector.load %arg12[%c0_91, %c192_92] : memref<64x288xbf16, #tpu.memory_space<vmem>>, vector<64x32xbf16>
    tpu.vector_store %arg12[%c0_91, %c192_92], %80 {strides = array<i32>} : memref<64x288xbf16, #tpu.memory_space<vmem>>, vector<64x32xbf16>,
    %c2_93 = arith.constant 2 : index
    %c1_94 = arith.constant 1 : index
    %c0_95 = arith.constant 0 : index
    %82 = vector.load %arg11[%c2_93, %c1_94, %c0_95] : memref<10x10x32xf32, #tpu.memory_space<vmem>>, vector<8x8x32xf32>
    %83 = vector.shape_cast %82 : vector<8x8x32xf32> to vector<64x32xf32>
    %84 = arith.truncf %83 : vector<64x32xf32> to vector<64x32xbf16>
    %c0_96 = arith.constant 0 : index
    %c224_97 = arith.constant 224 : index
    %85 = vector.load %arg12[%c0_96, %c224_97] : memref<64x288xbf16, #tpu.memory_space<vmem>>, vector<64x32xbf16>
    tpu.vector_store %arg12[%c0_96, %c224_97], %84 {strides = array<i32>} : memref<64x288xbf16, #tpu.memory_space<vmem>>, vector<64x32xbf16>,
    %c2_98 = arith.constant 2 : index
    %c2_99 = arith.constant 2 : index
    %c0_100 = arith.constant 0 : index
    %86 = vector.load %arg11[%c2_98, %c2_99, %c0_100] : memref<10x10x32xf32, #tpu.memory_space<vmem>>, vector<8x8x32xf32>
    %87 = vector.shape_cast %86 : vector<8x8x32xf32> to vector<64x32xf32>
    %88 = arith.truncf %87 : vector<64x32xf32> to vector<64x32xbf16>
    %c0_101 = arith.constant 0 : index
    %c256_102 = arith.constant 256 : index
    %89 = vector.load %arg12[%c0_101, %c256_102] : memref<64x288xbf16, #tpu.memory_space<vmem>>, vector<64x32xbf16>
    tpu.vector_store %arg12[%c0_101, %c256_102], %88 {strides = array<i32>} : memref<64x288xbf16, #tpu.memory_space<vmem>>, vector<64x32xbf16>,
    %c0_103 = arith.constant 0 : index
    %c0_104 = arith.constant 0 : index
    %90 = vector.load %arg12[%c0_103, %c0_104] : memref<64x288xbf16, #tpu.memory_space<vmem>>, vector<64x288xbf16>
    %c0_105 = arith.constant 0 : index
    %c0_106 = arith.constant 0 : index
    %91 = vector.load %arg4[%c0_105, %c0_106] : memref<288x32xbf16, #tpu.memory_space<vmem>>, vector<288x32xbf16>
    %cst_107 = arith.constant dense<0.000000e+00> : vector<64x32xf32>
    %92 = tpu.matmul %90, %91, %cst_107 {dimension_numbers = #tpu.dot_dimension_numbers<[1], [0], [0], [1], [0, 0, 1, 1], [], []>} : vector<64x288xbf16>, vector<288x32xbf16>, vector<64x32xf32> -> vector<64x32xf32>
    %c0_108 = arith.constant 0 : index
    %c0_109 = arith.constant 0 : index
    %93 = vector.load %arg5[%c0_108, %c0_109] : memref<1x32xf32, #tpu.memory_space<vmem>>, vector<1x32xf32>
    %94 = vector.broadcast %93 : vector<1x32xf32> to vector<64x32xf32>
    %95 = arith.addf %92, %94 : vector<64x32xf32>
    %cst_110 = arith.constant dense<0.000000e+00> : vector<32xf32>
    %96 = vector.multi_reduction <add>, %95, %cst_110 [0] : vector<64x32xf32> to vector<32xf32>
    %97 = vector.shape_cast %96 : vector<32xf32> to vector<1x32xf32>
    %cst_111 = arith.constant 6.400000e+01 : f32
    %98 = vector.broadcast %cst_111 : f32 to vector<1x32xf32>
    %99 = arith.divf %97, %98 : vector<1x32xf32>
    %c0_112 = arith.constant 0 : index
    %c0_113 = arith.constant 0 : index
    %100 = vector.load %arg6[%c0_112, %c0_113] : memref<2x32xf32, #tpu.memory_space<vmem>>, vector<2x32xf32>
    %101 = vector.broadcast %99 : vector<1x32xf32> to vector<2x32xf32>
    %102 = arith.mulf %100, %101 : vector<2x32xf32>
    %cst_114 = arith.constant dense<0.000000e+00> : vector<2xf32>
    %103 = vector.multi_reduction <add>, %102, %cst_114 [1] : vector<2x32xf32> to vector<2xf32>
    %104 = vector.shape_cast %103 : vector<2xf32> to vector<2x1xf32>
    %cst_115 = arith.constant 0.000000e+00 : f32
    %105 = vector.broadcast %cst_115 : f32 to vector<2x1xf32>
    %106 = arith.maximumf %104, %105 : vector<2x1xf32>
    %c0_116 = arith.constant 0 : index
    %c0_117 = arith.constant 0 : index
    %107 = vector.load %arg7[%c0_116, %c0_117] : memref<2x32xf32, #tpu.memory_space<vmem>>, vector<2x32xf32>
    %108 = vector.broadcast %106 : vector<2x1xf32> to vector<2x32xf32>
    %109 = arith.mulf %107, %108 : vector<2x32xf32>
    %cst_118 = arith.constant dense<0.000000e+00> : vector<32xf32>
    %110 = vector.multi_reduction <add>, %109, %cst_118 [0] : vector<2x32xf32> to vector<32xf32>
    %111 = vector.shape_cast %110 : vector<32xf32> to vector<1x32xf32>
    %112 = arith.negf %111 : vector<1x32xf32>
    %113 = math.exp %112 : vector<1x32xf32>
    %cst_119 = arith.constant 1.000000e+00 : f32
    %114 = vector.broadcast %cst_119 : f32 to vector<1x32xf32>
    %115 = arith.addf %114, %113 : vector<1x32xf32>
    %116 = arith.divf %114, %115 : vector<1x32xf32>
    %117 = vector.broadcast %116 : vector<1x32xf32> to vector<64x32xf32>
    %118 = arith.mulf %95, %117 : vector<64x32xf32>
    %119 = arith.addf %118, %1 : vector<64x32xf32>
    %cst_120 = arith.constant 0.000000e+00 : f32
    %120 = vector.broadcast %cst_120 : f32 to vector<64x32xf32>
    %121 = arith.maximumf %119, %120 : vector<64x32xf32>
    %c0_121 = arith.constant 0 : index
    %c0_122 = arith.constant 0 : index
    %c0_123 = arith.constant 0 : index
    %122 = vector.load %arg8[%c0_121, %c0_122, %c0_123] : memref<1x64x32xf32, #tpu.memory_space<vmem>>, vector<1x64x32xf32>
    %123 = vector.shape_cast %122 : vector<1x64x32xf32> to vector<64x32xf32>
    %124 = vector.shape_cast %121 : vector<64x32xf32> to vector<1x64x32xf32>
    tpu.vector_store %arg8[%c0_121, %c0_122, %c0_123], %124 {strides = array<i32>} : memref<1x64x32xf32, #tpu.memory_space<vmem>>, vector<1x64x32xf32>,
    return
  }
  func.func @transform_0(%arg0: i32) -> (i32, i32, i32) {
    %c0_i32 = arith.constant 0 : i32
    %c0_i32_0 = arith.constant 0 : i32
    %c0_i32_1 = arith.constant 0 : i32
    return %arg0, %c0_i32, %c0_i32_0 : i32, i32, i32
  }
  func.func @transform_1(%arg0: i32) -> (i32, i32) {
    %c0_i32 = arith.constant 0 : i32
    %c0_i32_0 = arith.constant 0 : i32
    %c0_i32_1 = arith.constant 0 : i32
    return %c0_i32, %c0_i32_0 : i32, i32
  }
  func.func @transform_2(%arg0: i32) -> (i32, i32) {
    %c0_i32 = arith.constant 0 : i32
    %c0_i32_0 = arith.constant 0 : i32
    %c0_i32_1 = arith.constant 0 : i32
    return %c0_i32, %c0_i32_0 : i32, i32
  }
  func.func @transform_3(%arg0: i32) -> (i32, i32) {
    %c0_i32 = arith.constant 0 : i32
    %c0_i32_0 = arith.constant 0 : i32
    %c0_i32_1 = arith.constant 0 : i32
    return %c0_i32, %c0_i32_0 : i32, i32
  }
  func.func @transform_4(%arg0: i32) -> (i32, i32) {
    %c0_i32 = arith.constant 0 : i32
    %c0_i32_0 = arith.constant 0 : i32
    %c0_i32_1 = arith.constant 0 : i32
    return %c0_i32, %c0_i32_0 : i32, i32
  }
  func.func @transform_5(%arg0: i32) -> (i32, i32) {
    %c0_i32 = arith.constant 0 : i32
    %c0_i32_0 = arith.constant 0 : i32
    %c0_i32_1 = arith.constant 0 : i32
    return %c0_i32, %c0_i32_0 : i32, i32
  }
  func.func @transform_6(%arg0: i32) -> (i32, i32) {
    %c0_i32 = arith.constant 0 : i32
    %c0_i32_0 = arith.constant 0 : i32
    %c0_i32_1 = arith.constant 0 : i32
    return %c0_i32, %c0_i32_0 : i32, i32
  }
  func.func @transform_7(%arg0: i32) -> (i32, i32, i32) {
    %c0_i32 = arith.constant 0 : i32
    %c0_i32_0 = arith.constant 0 : i32
    %c0_i32_1 = arith.constant 0 : i32
    return %arg0, %c0_i32, %c0_i32_0 : i32, i32, i32
  }
}

</mosaic_0001>

<bundles_post_ra>
// kernel: se_basic_block_forward.1
= control target key start
LH: loop header
LB: loop body
LE: loop exit
PB: predicated region body
PF: predicated region fallthrough
CT: control target
= control target key end

     0   :  { %12 = vsyncpa [#allocation7], 0  ;;  %s3737_s0 = inlined_call_operand.vmem [shape: f32[2,64,32], index: 0, kind: input, shape index: {}]   ;;  %s3738_s1 = inlined_call_operand.vmem [shape: bf16[288,32], index: 1, kind: input, shape index: {}]   ;;  %s3739_s2 = inlined_call_operand.vmem [shape: f32[1,32], index: 2, kind: input, shape index: {}]   ;;  %s3740_s3 = inlined_call_operand.vmem [shape: bf16[288,32], index: 3, kind: input, shape index: {}]   ;;  %s3741_s4 = inlined_call_operand.vmem [shape: f32[1,32], index: 4, kind: input, shape index: {}]   ;;  %s3742_s5 = inlined_call_operand.vmem [shape: f32[2,32], index: 5, kind: input, shape index: {}]   ;;  %s3743_s6 = inlined_call_operand.vmem [shape: f32[2,32], index: 6, kind: input, shape index: {}]   ;;  %s3744_s7 = inlined_call_operand.hbm [shape: f32[2,64,32], index: 7, kind: output, shape index: {}]  }
   0x1   :  { %14 = vsyncpa [#allocation7 + $0x1], 0  ;;  %s3017_s24 = smov 0   ;;  %s3019_s25 = smov 0  }
   0x2   :  { %s3021_s26 = smov 0   ;;  %s3023_s27 = smov 0  }
   0x3 LB: > { %s3038_s28 = sadd.s32 4294967295, %s2968_s27   ;;  %s2306_s29 = sadd.s32 4294967294, %s2968_s27   ;;  %s2968_s27 = sphi %s3023_s27, %s3750_s27   ;;  %s2964_s26 = sphi %s3021_s26, %s3749_s26   ;;  %s2960_s25 = sphi %s3019_s25, %s3748_s25   ;;  %s2956_s24 = sphi %s3017_s24, %s3747_s24  }
   0x4   : > { %s3042_s30 = sadd.s32 1, %s2968_s27   ;;  %s179_s8 = sadd.s32 1, %s2964_s26 }
   0x5   : > { %s176_s9 = ssub.s32 %s2968_s27, %s3042_s30  ;;  %p189_p0 = scmp.ne.s32.totalorder %s2964_s26, %s2960_s25 }
   0x6   : > { %p177_p1 = scmp.eq.s32.totalorder %s176_s9, 0  ;;  %p190_p2 = scmp.eq.s32.totalorder %s3038_s28, 1 }
   0x7   : > { %p195_p3 = scmp.ne.s32.totalorder %s2960_s25, %s2956_s24  ;;  %p196_p4 = scmp.eq.s32.totalorder %s2306_s29, 1 }
   0x8   : > { %s3053_s10 = scalar_select %p177_p1, %s2964_s26, %s179_s8  }
   0x9   : > { %p3055_p5 = por %p190_p2, %p189_p0  ;;  %p3059_p6 = por %p196_p4, %p195_p3 }
   0xa   : > { %p2309_p7 = scmp.ge.s32.totalorder %s2968_s27, 1  ;;  %p240_p8 = scmp.lt.s32.totalorder %s2968_s27, 3 }
   0xc   : > { %p241_p9 = pnand %p2309_p7, %p240_p8 }
   0xd   : > { %p272_p10 = scmp.lt.s32.totalorder (!%p241_p9), %s3038_s28, 1  ;;  %s2971_s9 = smov (!%p241_p9), 32  }
   0xe   : > { %244 = sbr.rel (%p241_p9) target bundleno = 1064 (0x428), region = 48  ;;  %s2972_s21 = smov (!%p241_p9), 64  }
   0xf   : > { %s269_s15 = sand.u32 (!%p241_p9), 1, %s2960_s25  }
  0x10   : > { %s2310_s16 = sshll.u32 (!%p241_p9), %s269_s15, 6  ;;  %s3697_s29 = scalar_lea.sflag (!%p241_p9), [#allocation7], %s269_s15 }
  0x11   : > { %s271_s19 = scalar_lea.vmem (!%p241_p9), [#allocation6], %s2310_s16 }
  0x12   : > { %s2244_s20 = sshll.u32 (!%p241_p9), %s271_s19, 4  ;;  %s3685_s20 = int_to_ptr.vmem [resolvable:$true] %s2244_s20 }
  0x13   : > { %vm286_vm0 = vcmask 261120   ;;  %vm288_vm1 = vcmask 254976   ;;  %v2970_v0 = vmov 0.0   ;;  %v2840_v1 = vld [vmem:[%s3738_s1 + $0x78] sm:$0xff]   ;;  %s273_s17 = scalar_select %p272_p10, %s3038_s28, 1  ;;  %v2842_v3 = vld [vmem:[%s3738_s1 + $0x70] sm:$0xff]  }
  0x14   : > { %287 = vst.msk [vmem:[#allocation2] sm:$0xff] %vm286_vm0, %v2970_v0  ;;  %290 = vst.msk [vmem:[#allocation2 + $0x10] sm:$0xff] %vm286_vm0, %v2970_v0  ;;  %v2841_v2 = vld [vmem:[%s3738_s1 + $0x38] sm:$0xff]   ;;  %2679 = vmatprep.subr.bf16.mxu0 %v2840_v1  ;;  %v2843_v4 = vld [vmem:[%s3738_s1 + $0x30] sm:$0xff]   ;;  %vm357_vm2 = vcmask 257024   ;;  %vm422_vm3 = vcmask 519424  }
  0x15   : > { %289 = vst.msk [vmem:[#allocation2 + $0x8] sm:$0x3] %vm288_vm1, %v2970_v0  ;;  %291 = vst.msk [vmem:[#allocation2 + $0x18] sm:$0x3] %vm288_vm1, %v2970_v0  ;;  %2680 = vmatpush3.bf16.msra.mxu0 %v2841_v2  ;;  %s2533_s18 = sshll.u32 %s273_s17, 6  ;;  %v2844_v18 = vld [vmem:[%s3738_s1 + $0x68] sm:$0xff]  }
  0x16   : > { %292 = vst.msk [vmem:[#allocation2 + $0x20] sm:$0xff] %vm286_vm0, %v2970_v0  ;;  %294 = vst.msk [vmem:[#allocation2 + $0x30] sm:$0xff] %vm286_vm0, %v2970_v0  ;;  %s276_s23 = scalar_lea.vmem %s3737_s0, %s2533_s18  ;;  %2681 = vmatprep.subr.bf16.mxu0 %v2842_v3  ;;  %v2845_v19 = vld [vmem:[%s3738_s1 + $0x28] sm:$0xff]   ;;  %v2846_v21 = vld [vmem:[%s3738_s1 + $0x60] sm:$0xff]   ;;  %s2973_s17 = smov 96   ;;  %vm487_vm4 = vcmask 781824  }
  0x17   : > { %293 = vst.msk [vmem:[#allocation2 + $0x28] sm:$0x3] %vm288_vm1, %v2970_v0  ;;  %295 = vst.msk [vmem:[#allocation2 + $0x38] sm:$0x3] %vm288_vm1, %v2970_v0  ;;  %v3122_v5 = vld [vmem:[%s276_s23] sm:$0xff]  ;;  %v3124_v6 = vld [vmem:[%s276_s23 + $0x8] sm:$0xff] }
  0x18   : > { %296 = vst.msk [vmem:[#allocation2 + $0x40] sm:$0xff] %vm286_vm0, %v2970_v0  ;;  %298 = vst.msk [vmem:[#allocation2 + $0x50] sm:$0xff] %vm286_vm0, %v2970_v0  ;;  %v3126_v7 = vld [vmem:[%s276_s23 + $0x10] sm:$0xff]  ;;  %v3134_v10 = vld [vmem:[%s276_s23 + $0x18] sm:$0xff]  ;;  %vm552_vm5 = vcmask 1044224   ;;  %s2678_s18 = sshll.u32 %s3038_s28, 10 }
  0x19   : > { %297 = vst.msk [vmem:[#allocation2 + $0x48] sm:$0x3] %vm288_vm1, %v2970_v0  ;;  %299 = vst.msk [vmem:[#allocation2 + $0x58] sm:$0x3] %vm288_vm1, %v2970_v0  ;;  %2682 = vmatpush3.bf16.msra.mxu0 %v2843_v4  ;;  %v3138_v12 = vld [vmem:[%s276_s23 + $0x20] sm:$0xff]  ;;  %v3140_v13 = vld [vmem:[%s276_s23 + $0x28] sm:$0xff] }
  0x1a   : > { %300 = vst.msk [vmem:[#allocation2 + $0x60] sm:$0xff] %vm286_vm0, %v2970_v0  ;;  %302 = vst.msk [vmem:[#allocation2 + $0x70] sm:$0xff] %vm286_vm0, %v2970_v0  ;;  %v3142_v14 = vld [vmem:[%s276_s23 + $0x30] sm:$0xff]  ;;  %v3150_v15 = vld [vmem:[%s276_s23 + $0x38] sm:$0xff]  ;;  %2683 = vmatprep.subr.bf16.mxu0 %v2844_v18  ;;  %s3683_s23 = scalar_lea.hbm %s3744_s7, %s2678_s18 }
  0x1b   : > { %301 = vst.msk [vmem:[#allocation2 + $0x68] sm:$0x3] %vm288_vm1, %v2970_v0  ;;  %303 = vst.msk [vmem:[#allocation2 + $0x78] sm:$0x3] %vm288_vm1, %v2970_v0  ;;  %v317_v17 = vld [vmem:[#allocation2] sm:$0xff]  ;;  %v2853_v18 = vld [vmem:[%s3738_s1 + $0x8] sm:$0xff]  }
  0x1c   : > { %304 = vst.msk [vmem:[#allocation2 + $0x80] sm:$0xff] %vm286_vm0, %v2970_v0  ;;  %306 = vst.msk [vmem:[#allocation2 + $0x90] sm:$0xff] %vm286_vm0, %v2970_v0  ;;  %v366_v8 = vld [vmem:[#allocation2 + $0x1] sm:$0xff]  ;;  %v2534_v20 = vpack.c.bf16 %v317_v17, %v317_v17 }
  0x1d   : > { %305 = vst.msk [vmem:[#allocation2 + $0x88] sm:$0x3] %vm288_vm1, %v2970_v0  ;;  %307 = vst.msk [vmem:[#allocation2 + $0x98] sm:$0x3] %vm288_vm1, %v2970_v0  ;;  %v431_v9 = vld [vmem:[#allocation2 + $0x2] sm:$0xff]  ;;  %v2542_v11 = vpack.c.bf16 %v366_v8, %v366_v8  ;;  %2684 = vmatpush3.bf16.msra.mxu0 %v2845_v19  ;;  %v2848_v8 = vld [vmem:[%s3738_s1 + $0x58] sm:$0xff]  }
  0x1e   : > { %1227 = vst.msk [vmem:[#allocation4] sm:$0xff] %vm286_vm0, %v2970_v0  ;;  %1229 = vst.msk [vmem:[#allocation4 + $0x10] sm:$0xff] %vm286_vm0, %v2970_v0  ;;  %v2550_v16 = vpack.c.bf16 %v431_v9, %v431_v9  ;;  %v2847_v22 = vld [vmem:[%s3738_s1 + $0x20] sm:$0xff]   ;;  %2685 = vmatprep.subr.bf16.mxu0 %v2846_v21  ;;  %v2849_v9 = vld [vmem:[%s3738_s1 + $0x18] sm:$0xff]  }
  0x1f   : > { %1228 = vst.msk [vmem:[#allocation4 + $0x8] sm:$0x3] %vm288_vm1, %v2970_v0  ;;  %1230 = vst.msk [vmem:[#allocation4 + $0x18] sm:$0x3] %vm288_vm1, %v2970_v0  ;;  %398 = vrot.lane.b32.xlu0 %v2542_v11, %s2971_s9  ;;  %v2850_v11 = vld [vmem:[%s3738_s1 + $0x50] sm:$0xff]   ;;  %v2852_v17 = vld [vmem:[%s3738_s1 + $0x48] sm:$0xff]  }
  0x20   : > { %1231 = vst.msk [vmem:[#allocation4 + $0x20] sm:$0xff] %vm286_vm0, %v2970_v0  ;;  %1233 = vst.msk [vmem:[#allocation4 + $0x30] sm:$0xff] %vm286_vm0, %v2970_v0  ;;  %v2855_v19 = vld [vmem:[%s3738_s1 + $0x88] sm:$0xff]   ;;  %v2856_v21 = vld [vmem:[%s3738_s1] sm:$0xff]  }
  0x21   : > { %1232 = vst.msk [vmem:[#allocation4 + $0x28] sm:$0x3] %vm288_vm1, %v2970_v0  ;;  %1234 = vst.msk [vmem:[#allocation4 + $0x38] sm:$0x3] %vm288_vm1, %v2970_v0  ;;  %2686 = vmatpush3.bf16.msra.mxu0 %v2847_v22  ;;  %2771 = vmatprep.subr.bf16.mxu1 %v2855_v19  ;;  %v2860_v22 = vld [vmem:[%s3738_s1 + $0x80] sm:$0xff]  }
  0x22   : > { %1235 = vst.msk [vmem:[#allocation4 + $0x40] sm:$0xff] %vm286_vm0, %v2970_v0  ;;  %1237 = vst.msk [vmem:[#allocation4 + $0x50] sm:$0xff] %vm286_vm0, %v2970_v0  ;;  %2687 = vmatprep.subr.bf16.mxu0 %v2848_v8  ;;  %2772 = vmatpush3.bf16.msra.mxu1 %v2855_v19 }
  0x23   : > { %1236 = vst.msk [vmem:[#allocation4 + $0x48] sm:$0x3] %vm288_vm1, %v2970_v0  ;;  %1238 = vst.msk [vmem:[#allocation4 + $0x58] sm:$0x3] %vm288_vm1, %v2970_v0  ;;  %463 = vrot.lane.b32.xlu0 %v2550_v16, %s2972_s21  ;;  %v2851_v16 = vld [vmem:[%s3738_s1 + $0x10] sm:$0xff]   ;;  %2773 = vmatprep.subr.bf16.mxu1 %v2860_v22 }
  0x24   : > { %1239 = vst.msk [vmem:[#allocation4 + $0x60] sm:$0xff] %vm286_vm0, %v2970_v0  ;;  %1241 = vst.msk [vmem:[#allocation4 + $0x70] sm:$0xff] %vm286_vm0, %v2970_v0 }
  0x25   : > { %1240 = vst.msk [vmem:[#allocation4 + $0x68] sm:$0x3] %vm288_vm1, %v2970_v0  ;;  %1242 = vst.msk [vmem:[#allocation4 + $0x78] sm:$0x3] %vm288_vm1, %v2970_v0  ;;  %2688 = vmatpush3.bf16.msra.mxu0 %v2849_v9 }
  0x26   : > { %1243 = vst.msk [vmem:[#allocation4 + $0x80] sm:$0xff] %vm286_vm0, %v2970_v0  ;;  %1245 = vst.msk [vmem:[#allocation4 + $0x90] sm:$0xff] %vm286_vm0, %v2970_v0  ;;  %2689 = vmatprep.subr.bf16.mxu0 %v2850_v11  ;;  %2774 = vmatpush3.bf16.msra.mxu1 %v2860_v22 }
  0x27   : > { %1244 = vst.msk [vmem:[#allocation4 + $0x88] sm:$0x3] %vm288_vm1, %v2970_v0  ;;  %1246 = vst.msk [vmem:[#allocation4 + $0x98] sm:$0x3] %vm288_vm1, %v2970_v0 }
  0x28   : > { %309 = vst.msk [vmem:[#allocation2 + $0x11] sm:$0xff] %vm286_vm0, %v3122_v5  ;;  %310 = vst.msk [vmem:[#allocation2 + $0x21] sm:$0xff] %vm286_vm0, %v3124_v6 }
  0x29   : > { %311 = vst.msk [vmem:[#allocation2 + $0x31] sm:$0xff] %vm286_vm0, %v3126_v7  ;;  %312 = vst.msk [vmem:[#allocation2 + $0x41] sm:$0xff] %vm286_vm0, %v3134_v10  ;;  %2690 = vmatpush3.bf16.msra.mxu0 %v2851_v16 }
  0x2a   : > { %313 = vst.msk [vmem:[#allocation2 + $0x51] sm:$0xff] %vm286_vm0, %v3138_v12  ;;  %314 = vst.msk [vmem:[#allocation2 + $0x61] sm:$0xff] %vm286_vm0, %v3140_v13  ;;  %2691 = vmatprep.subr.bf16.mxu0 %v2852_v17 }
  0x2b   : > { %315 = vst.msk [vmem:[#allocation2 + $0x71] sm:$0xff] %vm286_vm0, %v3142_v14  ;;  %316 = vst.msk [vmem:[#allocation2 + $0x81] sm:$0xff] %vm286_vm0, %v3150_v15 }
  0x2c   : > { %358 = vst.msk [vmem:[#allocation3] sm:$0xf] %vm357_vm2, %v2534_v20  ;;  %v2854_v20 = vld [vmem:[%s3738_s1 + $0x40] sm:$0xff]  }
  0x2d   : > { %2692 = vmatpush3.bf16.msra.mxu0 %v2853_v18 }
  0x2e   : > { %2693 = vmatprep.subr.bf16.mxu0 %v2854_v20 }
  0x2f   : > { %v609_v23 = vld [vmem:[#allocation2 + $0x12] sm:$0xff]  ;;  %v610_v24 = vld [vmem:[#allocation2 + $0x22] sm:$0xff] }
  0x30   : > { %v367_v25 = vld [vmem:[#allocation2 + $0x11] sm:$0xff]  ;;  %v3169_v26 = vpack.c.bf16 %v609_v23, %v609_v23  ;;  %v3171_v27 = vpack.c.bf16 %v610_v24, %v610_v24  ;;  %v674_v29 = vld [vmem:[#allocation2 + $0x20] sm:$0xff] }
  0x31   : > { %v2543_v28 = vpack.c.bf16 %v367_v25, %v367_v25  ;;  %v675_v30 = vld [vmem:[#allocation2 + $0x30] sm:$0xff]  ;;  %v3173_v32 = vpack.c.bf16 %v674_v29, %v674_v29  ;;  %v738_v35 = vld [vmem:[#allocation2 + $0x21] sm:$0xff]  ;;  %2694 = vmatpush3.bf16.msra.mxu0 %v2856_v21 }
  0x32   : > { %v496_v31 = vld [vmem:[#allocation2 + $0x10] sm:$0xff]  ;;  %v3175_v33 = vpack.c.bf16 %v675_v30, %v675_v30  ;;  %641 = vrot.lane.b32.xlu1 %v3169_v26, %s2971_s9  ;;  %v3181_v38 = vpack.c.bf16 %v738_v35, %v738_v35  ;;  %v612_v41 = vld [vmem:[#allocation2 + $0x42] sm:$0xff]  ;;  %842 = vst.msk [vmem:[#allocation3 + $0x8] sm:$0xf] %vm357_vm2, %v3171_v27 }
  0x33   : > { %v3177_v34 = vpack.c.bf16 %v496_v31, %v496_v31  ;;  %v739_v36 = vld [vmem:[#allocation2 + $0x31] sm:$0xff]  ;;  %v676_v42 = vld [vmem:[#allocation2 + $0x40] sm:$0xff]  ;;  %601 = vst.msk [vmem:[#allocation3 + $0x4] sm:$0xf] %vm357_vm2, %v2543_v28  ;;  %400 = vrot.lane.b32.xlu0 %v2543_v28, %s2971_s9  ;;  %v3191_v44 = vpack.c.bf16 %v612_v41, %v612_v41  ;;  %360 = vst.msk [vmem:[#allocation3 + $0x18] sm:$0xf] %vm357_vm2, %v3173_v32 }
  0x34   : > { %v611_v37 = vld [vmem:[#allocation2 + $0x32] sm:$0xff]  ;;  %v3183_v39 = vpack.c.bf16 %v739_v36, %v739_v36  ;;  %v3193_v45 = vpack.c.bf16 %v676_v42, %v676_v42  ;;  %v740_v47 = vld [vmem:[#allocation2 + $0x41] sm:$0xff]  ;;  %361 = vst.msk [vmem:[#allocation3 + $0x24] sm:$0xf] %vm357_vm2, %v3175_v33  ;;  %602 = vst.msk [vmem:[#allocation3 + $0x10] sm:$0xf] %vm357_vm2, %v3181_v38 }
  0x35   : > { %v3185_v40 = vpack.c.bf16 %v611_v37, %v611_v37  ;;  %v677_v43 = vld [vmem:[#allocation2 + $0x50] sm:$0xff]  ;;  %359 = vst.msk [vmem:[#allocation3 + $0xc] sm:$0xf] %vm357_vm2, %v3177_v34  ;;  %v3203_v50 = vpack.c.bf16 %v740_v47, %v740_v47  ;;  %v614_v53 = vld [vmem:[#allocation2 + $0x62] sm:$0xff]  ;;  %844 = vst.msk [vmem:[#allocation3 + $0x20] sm:$0xf] %vm357_vm2, %v3191_v44 }
  0x36   : > { %v3195_v46 = vpack.c.bf16 %v677_v43, %v677_v43  ;;  %v741_v48 = vld [vmem:[#allocation2 + $0x51] sm:$0xff]  ;;  %v678_v54 = vld [vmem:[#allocation2 + $0x60] sm:$0xff]  ;;  %603 = vst.msk [vmem:[#allocation3 + $0x1c] sm:$0xf] %vm357_vm2, %v3183_v39  ;;  %v3215_v56 = vpack.c.bf16 %v614_v53, %v614_v53  ;;  %362 = vst.msk [vmem:[#allocation3 + $0x30] sm:$0xf] %vm357_vm2, %v3193_v45  ;;  %643 = vrot.lane.b32.xlu1 %v3171_v27, %s2971_s9 }
  0x37   : > { %v613_v49 = vld [vmem:[#allocation2 + $0x52] sm:$0xff]  ;;  %v3205_v51 = vpack.c.bf16 %v741_v48, %v741_v48  ;;  %843 = vst.msk [vmem:[#allocation3 + $0x14] sm:$0xf] %vm357_vm2, %v3185_v40  ;;  %v3217_v57 = vpack.c.bf16 %v678_v54, %v678_v54  ;;  %v742_v59 = vld [vmem:[#allocation2 + $0x61] sm:$0xff]  ;;  %604 = vst.msk [vmem:[#allocation3 + $0x28] sm:$0xf] %vm357_vm2, %v3203_v50  ;;  %706 = vrot.lane.b32.xlu0 %v3173_v32, %s2972_s21 }
  0x38   : > { %v3207_v52 = vpack.c.bf16 %v613_v49, %v613_v49  ;;  %v679_v55 = vld [vmem:[#allocation2 + $0x70] sm:$0xff]  ;;  %363 = vst.msk [vmem:[#allocation3 + $0x3c] sm:$0xf] %vm357_vm2, %v3195_v46  ;;  %v3229_v62 = vpack.c.bf16 %v742_v59, %v742_v59  ;;  %v616_v1 = vld [vmem:[#allocation2 + $0x82] sm:$0xff]  ;;  %846 = vst.msk [vmem:[#allocation3 + $0x38] sm:$0xf] %vm357_vm2, %v3215_v56 }
  0x39   : > { %v3219_v58 = vpack.c.bf16 %v679_v55, %v679_v55  ;;  %v743_v60 = vld [vmem:[#allocation2 + $0x71] sm:$0xff]  ;;  %v744_v2 = vld [vmem:[#allocation2 + $0x81] sm:$0xff]  ;;  %605 = vst.msk [vmem:[#allocation3 + $0x34] sm:$0xf] %vm357_vm2, %v3205_v51  ;;  %v3243_v3 = vpack.c.bf16 %v616_v1, %v616_v1  ;;  %364 = vst.msk [vmem:[#allocation3 + $0x48] sm:$0xf] %vm357_vm2, %v3217_v57 }
  0x3a   : > { %v615_v61 = vld [vmem:[#allocation2 + $0x72] sm:$0xff]  ;;  %v3231_v63 = vpack.c.bf16 %v743_v60, %v743_v60  ;;  %845 = vst.msk [vmem:[#allocation3 + $0x2c] sm:$0xf] %vm357_vm2, %v3207_v52  ;;  %v3245_v4 = vpack.c.bf16 %v744_v2, %v744_v2  ;;  %606 = vst.msk [vmem:[#allocation3 + $0x40] sm:$0xf] %vm357_vm2, %v3229_v62  ;;  %465 = vrot.lane.b32.xlu1 %v3169_v26, %s2972_s21  ;;  %v680_v29 = vld [vmem:[#allocation2 + $0x80] sm:$0xff] }
  0x3b   : > { %v3233_v0 = vpack.c.bf16 %v615_v61, %v615_v61  ;;  %365 = vst.msk [vmem:[#allocation3 + $0x54] sm:$0xf] %vm357_vm2, %v3219_v58  ;;  %848 = vst.msk [vmem:[#allocation3 + $0x50] sm:$0xf] %vm357_vm2, %v3243_v3  ;;  %528 = vrot.lane.b32.xlu0 %v3177_v34, %s2973_s17  ;;  %v809_v25 = vld [vmem:[#allocation2 + $0x92] sm:$0xff]  ;;  %v2588_v30 = vpack.c.bf16 %v680_v29, %v680_v29 }
  0x3c   : > { %607 = vst.msk [vmem:[#allocation3 + $0x4c] sm:$0xf] %vm357_vm2, %v3231_v63  ;;  %608 = vst.msk [vmem:[#allocation3 + $0x58] sm:$0xf] %vm357_vm2, %v3245_v4  ;;  %v2605_v26 = vpack.c.bf16 %v809_v25, %v809_v25  ;;  %v681_v31 = vld [vmem:[#allocation2 + $0x90] sm:$0xff] }
  0x3d   : > { %847 = vst.msk [vmem:[#allocation3 + $0x44] sm:$0xf] %vm357_vm2, %v3233_v0 }
  0x3e   : > { %708 = vrot.lane.b32.xlu1 %v3175_v33, %s2972_s21  ;;  %v2861_v23 = vld [vmem:[#allocation3 + $0x8] ss:$12 sps:$4 sm:$0xff]   ;;  %849 = vst.msk [vmem:[#allocation3 + $0x5c] sm:$0xf] %vm357_vm2, %v2605_v26 }
  0x3f   : > { %770 = vrot.lane.b32.xlu0 %v3181_v38, %s2973_s17  ;;  %2775 = vmatprep.mubr.msk.bf16.mxu1 %vm286_vm0, %v2861_v23 }
  0x41   : > { %v2862_v24 = vld [vmem:[#allocation3 + $0x20] ss:$12 sps:$4 sm:$0xff]  }
  0x42   : > { %530 = vrot.lane.b32.xlu1 %v3173_v32, %s2973_s17  ;;  %2776 = vmatmul.mubr.msk.bf16.vlgmr.msra.gmra.mxu1 %vm286_vm0, %v2862_v24  ;;  %v2589_v32 = vpack.c.bf16 %v681_v31, %v681_v31 }
  0x43   : > { %402 = vrot.lane.b32.xlu0 %v3181_v38, %s2971_s9 }
  0x45   : > { %v2866_v28 = vld [vmem:[#allocation3 + $0x50] ss:$12 sps:$4 sm:$0xff]  }
  0x46   : > { %772 = vrot.lane.b32.xlu1 %v3183_v39, %s2973_s17 }
  0x47   : > { %645 = vrot.lane.b32.xlu0 %v3185_v40, %s2971_s9 }
  0x4a   : > { %404 = vrot.lane.b32.xlu1 %v3183_v39, %s2971_s9 }
  0x4b   : > { %467 = vrot.lane.b32.xlu0 %v3171_v27, %s2972_s21  ;;  %v2865_v27 = vld [vmem:[#allocation3 + $0x38] ss:$12 sps:$4 sm:$0xff]  }
  0x4c   : > { %2779 = vmatprep.mubr.msk.bf16.mxu1 %vm286_vm0, %v2865_v27 }
  0x4d   : > { %2780 = vmatmul.mubr.msk.bf16.gmra.mxu1 %vm286_vm0, %v2866_v28 }
  0x4e   : > { %647 = vrot.lane.b32.xlu1 %v3191_v44, %s2971_s9 }
  0x4f   : > { %710 = vrot.lane.b32.xlu0 %v3193_v45, %s2972_s21 }
  0x52   : > { %469 = vrot.lane.b32.xlu1 %v3185_v40, %s2972_s21 }
  0x53   : > { %532 = vrot.lane.b32.xlu0 %v3175_v33, %s2973_s17  ;;  %v745_v33 = vld [vmem:[#allocation2 + $0x91] sm:$0xff] }
  0x54   : > { %v2597_v34 = vpack.c.bf16 %v745_v33, %v745_v33 }
  0x56   : > { %712 = vrot.lane.b32.xlu1 %v3195_v46, %s2972_s21 }
  0x57   : > { %774 = vrot.lane.b32.xlu0 %v3203_v50, %s2973_s17 }
  0x5a   : > { %534 = vrot.lane.b32.xlu1 %v3193_v45, %s2973_s17 }
  0x5b   : > { %406 = vrot.lane.b32.xlu0 %v3203_v50, %s2971_s9 }
  0x5e   : > { %776 = vrot.lane.b32.xlu1 %v3205_v51, %s2973_s17 }
  0x5f   : > { %649 = vrot.lane.b32.xlu0 %v3207_v52, %s2971_s9 }
  0x62   : > { %408 = vrot.lane.b32.xlu1 %v3205_v51, %s2971_s9 }
  0x63   : > { %471 = vrot.lane.b32.xlu0 %v3191_v44, %s2972_s21 }
  0x66   : > { %651 = vrot.lane.b32.xlu1 %v3215_v56, %s2971_s9 }
  0x67   : > { %714 = vrot.lane.b32.xlu0 %v3217_v57, %s2972_s21 }
  0x6a   : > { %473 = vrot.lane.b32.xlu1 %v3207_v52, %s2972_s21 }
  0x6b   : > { %536 = vrot.lane.b32.xlu0 %v3195_v46, %s2973_s17 }
  0x6e   : > { %716 = vrot.lane.b32.xlu1 %v3219_v58, %s2972_s21 }
  0x6f   : > { %778 = vrot.lane.b32.xlu0 %v3229_v62, %s2973_s17 }
  0x72   : > { %538 = vrot.lane.b32.xlu1 %v3217_v57, %s2973_s17 }
  0x73   : > { %410 = vrot.lane.b32.xlu0 %v3229_v62, %s2971_s9 }
  0x76   : > { %780 = vrot.lane.b32.xlu1 %v3231_v63, %s2973_s17 }
  0x77   : > { %653 = vrot.lane.b32.xlu0 %v3233_v0, %s2971_s9 }
  0x7a   : > { %412 = vrot.lane.b32.xlu1 %v3231_v63, %s2971_s9 }
  0x7b   : > { %475 = vrot.lane.b32.xlu0 %v3215_v56, %s2972_s21 }
  0x7e   : > { %655 = vrot.lane.b32.xlu1 %v3243_v3, %s2971_s9 }
  0x7f   : > { %718 = vrot.lane.b32.xlu0 %v2588_v30, %s2972_s21 }
  0x82   : > { %477 = vrot.lane.b32.xlu1 %v3233_v0, %s2972_s21 }
  0x83   : > { %540 = vrot.lane.b32.xlu0 %v3219_v58, %s2973_s17 }
  0x86   : > { %720 = vrot.lane.b32.xlu1 %v2589_v32, %s2972_s21 }
  0x87   : > { %782 = vrot.lane.b32.xlu0 %v3245_v4, %s2973_s17 }
  0x8a   : > { %542 = vrot.lane.b32.xlu1 %v2588_v30, %s2973_s17 }
  0x8e   : > { %784 = vrot.lane.b32.xlu1 %v2597_v34, %s2973_s17 }
  0x91   : > { %v399_v35 = vpop.permute.xlu0 %398 }
  0x92   : > { %423 = vst.msk [vmem:[#allocation3] sm:$0xf] %vm422_vm3, %v399_v35 }
  0x95   : > { %v464_v36 = vpop.permute.xlu0 %463 }
  0x96   : > { %488 = vst.msk [vmem:[#allocation3] sm:$0xf] %vm487_vm4, %v464_v36 }
  0xa4   : > { %v642_v37 = vpop.permute.xlu1 %641 }
  0xa5   : > { %665 = vst.msk [vmem:[#allocation3 + $0x4] sm:$0xf] %vm422_vm3, %v642_v37  ;;  %v401_v38 = vpop.permute.xlu0 %400 }
  0xa6   : > { %424 = vst.msk [vmem:[#allocation3 + $0xc] sm:$0xf] %vm422_vm3, %v401_v38 }
  0xa8   : > { %v644_v39 = vpop.permute.xlu1 %643 }
  0xa9   : > { %666 = vst.msk [vmem:[#allocation3 + $0x10] sm:$0xf] %vm422_vm3, %v644_v39  ;;  %v707_v40 = vpop.permute.xlu0 %706  ;;  %v1304_v39 = vld [vmem:[#allocation4 + $0x1] sm:$0xff] }
  0xaa   : > { %730 = vst.msk [vmem:[#allocation3 + $0x4] sm:$0xf] %vm487_vm4, %v707_v40  ;;  %v2614_v40 = vpack.c.bf16 %v1304_v39, %v1304_v39 }
  0xac   : > { %v466_v41 = vpop.permute.xlu1 %465  ;;  %1336 = vrot.lane.b32.xlu0 %v2614_v40, %s2971_s9  ;;  %v2887_v40 = vld [vmem:[%s3740_s3 + $0x18] sm:$0xff]  }
  0xad   : > { %489 = vst.msk [vmem:[#allocation3 + $0xc] sm:$0xf] %vm487_vm4, %v466_v41  ;;  %v529_v42 = vpop.permute.xlu0 %528  ;;  %v1616_v41 = vld [vmem:[#allocation4 + $0x90] sm:$0xff] }
  0xae   : > { %553 = vst.msk [vmem:[#allocation3] sm:$0xf] %vm552_vm5, %v529_v42  ;;  %v1368_v42 = vld [vmem:[#allocation4 + $0x2] sm:$0xff] }
  0xb0   : > { %v709_v43 = vpop.permute.xlu1 %708 }
  0xb1   : > { %731 = vst.msk [vmem:[#allocation3 + $0x10] sm:$0xf] %vm487_vm4, %v709_v43  ;;  %v771_v44 = vpop.permute.xlu0 %770  ;;  %v2661_v43 = vpack.c.bf16 %v1616_v41, %v1616_v41 }
  0xb2   : > { %794 = vst.msk [vmem:[#allocation3 + $0x4] sm:$0xf] %vm552_vm5, %v771_v44  ;;  %v2622_v44 = vpack.c.bf16 %v1368_v42, %v1368_v42 }
  0xb3   : > { %1655 = vrot.lane.b32.xlu1 %v2661_v43, %s2972_s21 }
  0xb4   : > { %v531_v45 = vpop.permute.xlu1 %530  ;;  %1400 = vrot.lane.b32.xlu0 %v2622_v44, %s2972_s21  ;;  %v2888_v44 = vld [vmem:[%s3740_s3 + $0x50] sm:$0xff]  }
  0xb5   : > { %554 = vst.msk [vmem:[#allocation3 + $0xc] sm:$0xf] %vm552_vm5, %v531_v45  ;;  %v403_v46 = vpop.permute.xlu0 %402  ;;  %v2873_v45 = vld [vmem:[%s3740_s3 + $0x88] sm:$0xff]  }
  0xb6   : > { %425 = vst.msk [vmem:[#allocation3 + $0x18] sm:$0xf] %vm422_vm3, %v403_v46  ;;  %2783 = vmatprep.subr.bf16.mxu0 %v2873_v45  ;;  %v2874_v46 = vld [vmem:[%s3740_s3 + $0x80] sm:$0xff]  }
  0xb8   : > { %v773_v47 = vpop.permute.xlu1 %772 }
  0xb9   : > { %795 = vst.msk [vmem:[#allocation3 + $0x10] sm:$0xf] %vm552_vm5, %v773_v47  ;;  %v646_v48 = vpop.permute.xlu0 %645  ;;  %v1744_v47 = vld [vmem:[#allocation4 + $0x92] sm:$0xff] }
  0xba   : > { %667 = vst.msk [vmem:[#allocation3 + $0x1c] sm:$0xf] %vm422_vm3, %v646_v48  ;;  %v2677_v48 = vpack.c.bf16 %v1744_v47, %v1744_v47  ;;  %v2889_v47 = vld [vmem:[%s3740_s3 + $0x10] sm:$0xff]  }
  0xbc   : > { %v405_v49 = vpop.permute.xlu1 %404  ;;  %v2857_v52 = vld [vmem:[#allocation3] ss:$12 sps:$4 sm:$0xff]   ;;  %1784 = vst.msk [vmem:[#allocation5 + $0x5c] sm:$0xf] %vm357_vm2, %v2677_v48 }
  0xbd   : > { %426 = vst.msk [vmem:[#allocation3 + $0x24] sm:$0xf] %vm422_vm3, %v405_v49  ;;  %v468_v50 = vpop.permute.xlu0 %467  ;;  %v1256_v49 = vld [vmem:[#allocation4] sm:$0xff] }
  0xbe   : > { %490 = vst.msk [vmem:[#allocation3 + $0x18] sm:$0xf] %vm487_vm4, %v468_v50  ;;  %v2606_v50 = vpack.c.bf16 %v1256_v49, %v1256_v49  ;;  %v2890_v49 = vld [vmem:[%s3740_s3 + $0x48] sm:$0xff]  }
  0xc0   : > { %v648_v51 = vpop.permute.xlu1 %647  ;;  %v2859_v53 = vld [vmem:[#allocation3 + $0x4] ss:$12 sps:$4 sm:$0xff]   ;;  %1296 = vst.msk [vmem:[#allocation5] sm:$0xf] %vm357_vm2, %v2606_v50 }
  0xc1   : > { %668 = vst.msk [vmem:[#allocation3 + $0x28] sm:$0xf] %vm422_vm3, %v648_v51  ;;  %v711_v54 = vpop.permute.xlu0 %710  ;;  %1121 = vmatprep.mubr.bf16.mxu0 %v2859_v53 }
  0xc2   : > { %732 = vst.msk [vmem:[#allocation3 + $0x1c] sm:$0xf] %vm487_vm4, %v711_v54  ;;  %1122 = vmatmul.mubr.bf16.vlgmr.msra.gmra.mxu0 %v2857_v52 }
  0xc3   : > { %2784 = vmatpush3.bf16.msra.mxu0 %v2873_v45 }
  0xc4   : > { %v470_v55 = vpop.permute.xlu1 %469  ;;  %2785 = vmatprep.subr.bf16.mxu0 %v2874_v46 }
  0xc5   : > { %491 = vst.msk [vmem:[#allocation3 + $0x24] sm:$0xf] %vm487_vm4, %v470_v55  ;;  %v533_v56 = vpop.permute.xlu0 %532 }
  0xc6   : > { %555 = vst.msk [vmem:[#allocation3 + $0x18] sm:$0xf] %vm552_vm5, %v533_v56  ;;  %v3443_v56 = vld [vmem:[%s3739_s2] ss:$0 sm:$0xff] }
  0xc7   : > { %2786 = vmatpush3.bf16.msra.mxu0 %v2874_v46 }
  0xc8   : > { %v713_v57 = vpop.permute.xlu1 %712 }
  0xc9   : > { %733 = vst.msk [vmem:[#allocation3 + $0x28] sm:$0xf] %vm487_vm4, %v713_v57  ;;  %v775_v58 = vpop.permute.xlu0 %774 }
  0xca   : > { %796 = vst.msk [vmem:[#allocation3 + $0x1c] sm:$0xf] %vm552_vm5, %v775_v58 }
  0xcc   : > { %v535_v59 = vpop.permute.xlu1 %534 }
  0xcd   : > { %556 = vst.msk [vmem:[#allocation3 + $0x24] sm:$0xf] %vm552_vm5, %v535_v59  ;;  %v407_v60 = vpop.permute.xlu0 %406 }
  0xce   : > { %427 = vst.msk [vmem:[#allocation3 + $0x30] sm:$0xf] %vm422_vm3, %v407_v60 }
  0xd0   : > { %v777_v61 = vpop.permute.xlu1 %776 }
  0xd1   : > { %797 = vst.msk [vmem:[#allocation3 + $0x28] sm:$0xf] %vm552_vm5, %v777_v61  ;;  %v650_v62 = vpop.permute.xlu0 %649  ;;  %v854_v2 = vld [vmem:[#allocation3 + $0x18] sm:$0xff] }
  0xd2   : > { %669 = vst.msk [vmem:[#allocation3 + $0x34] sm:$0xf] %vm422_vm3, %v650_v62 }
  0xd4   : > { %v409_v63 = vpop.permute.xlu1 %408 }
  0xd5   : > { %428 = vst.msk [vmem:[#allocation3 + $0x3c] sm:$0xf] %vm422_vm3, %v409_v63  ;;  %v472_v0 = vpop.permute.xlu0 %471 }
  0xd6   : > { %492 = vst.msk [vmem:[#allocation3 + $0x30] sm:$0xf] %vm487_vm4, %v472_v0 }
  0xd8   : > { %v652_v1 = vpop.permute.xlu1 %651  ;;  %v856_v3 = vld [vmem:[#allocation3 + $0x24] sm:$0xff] }
  0xd9   : > { %v2863_v4 = vld [vmem:[#allocation3 + $0x1c] ss:$12 sps:$4 sm:$0xff]   ;;  %670 = vst.msk [vmem:[#allocation3 + $0x40] sm:$0xf] %vm422_vm3, %v652_v1  ;;  %v715_v8 = vpop.permute.xlu0 %714  ;;  %v2389_v9 = vcombine.low %v854_v2, %v856_v3 }
  0xda   : > { %1129 = vmatprep.mubr.bf16.mxu0 %v2863_v4  ;;  %734 = vst.msk [vmem:[#allocation3 + $0x34] sm:$0xf] %vm487_vm4, %v715_v8  ;;  %v2878_v8 = vld [vmem:[%s3740_s3 + $0x78] sm:$0xff]  }
  0xdb   : > { %1130 = vmatmul.mubr.bf16.gmra.mxu0 %v2389_v9  ;;  %2725 = vmatprep.subr.bf16.mxu1 %v2878_v8 }
  0xdc   : > { %v474_v11 = vpop.permute.xlu1 %473 }
  0xdd   : > { %493 = vst.msk [vmem:[#allocation3 + $0x3c] sm:$0xf] %vm487_vm4, %v474_v11  ;;  %v537_v16 = vpop.permute.xlu0 %536  ;;  %v2879_v11 = vld [vmem:[%s3740_s3 + $0x38] sm:$0xff]  }
  0xde   : > { %557 = vst.msk [vmem:[#allocation3 + $0x30] sm:$0xf] %vm552_vm5, %v537_v16  ;;  %2726 = vmatpush3.bf16.msra.mxu1 %v2879_v11  ;;  %v2880_v16 = vld [vmem:[%s3740_s3 + $0x70] sm:$0xff]  }
  0xdf   : > { %2727 = vmatprep.subr.bf16.mxu1 %v2880_v16 }
  0xe0   : > { %v717_v17 = vpop.permute.xlu1 %716 }
  0xe1   : > { %735 = vst.msk [vmem:[#allocation3 + $0x40] sm:$0xf] %vm487_vm4, %v717_v17  ;;  %v779_v18 = vpop.permute.xlu0 %778  ;;  %v2881_v17 = vld [vmem:[%s3740_s3 + $0x30] sm:$0xff]  }
  0xe2   : > { %798 = vst.msk [vmem:[#allocation3 + $0x34] sm:$0xf] %vm552_vm5, %v779_v18  ;;  %2728 = vmatpush3.bf16.msra.mxu1 %v2881_v17 }
  0xe4   : > { %v539_v19 = vpop.permute.xlu1 %538 }
  0xe5   : > { %558 = vst.msk [vmem:[#allocation3 + $0x3c] sm:$0xf] %vm552_vm5, %v539_v19  ;;  %v411_v20 = vpop.permute.xlu0 %410 }
  0xe6   : > { %429 = vst.msk [vmem:[#allocation3 + $0x48] sm:$0xf] %vm422_vm3, %v411_v20 }
  0xe8   : > { %v781_v21 = vpop.permute.xlu1 %780 }
  0xe9   : > { %799 = vst.msk [vmem:[#allocation3 + $0x40] sm:$0xf] %vm552_vm5, %v781_v21  ;;  %v654_v22 = vpop.permute.xlu0 %653  ;;  %v858_v26 = vld [vmem:[#allocation3 + $0x30] sm:$0xff] }
  0xea   : > { %671 = vst.msk [vmem:[#allocation3 + $0x4c] sm:$0xf] %vm422_vm3, %v654_v22 }
  0xec   : > { %v413_v23 = vpop.permute.xlu1 %412 }
  0xed   : > { %430 = vst.msk [vmem:[#allocation3 + $0x54] sm:$0xf] %vm422_vm3, %v413_v23  ;;  %v476_v24 = vpop.permute.xlu0 %475 }
  0xee   : > { %494 = vst.msk [vmem:[#allocation3 + $0x48] sm:$0xf] %vm487_vm4, %v476_v24  ;;  %v2882_v24 = vld [vmem:[%s3740_s3 + $0x68] sm:$0xff]  }
  0xef   : > { %2729 = vmatprep.subr.bf16.mxu1 %v2882_v24 }
  0xf0   : > { %v656_v25 = vpop.permute.xlu1 %655  ;;  %v860_v27 = vld [vmem:[#allocation3 + $0x3c] sm:$0xff] }
  0xf1   : > { %v2867_v28 = vld [vmem:[#allocation3 + $0x34] ss:$12 sps:$4 sm:$0xff]   ;;  %672 = vst.msk [vmem:[#allocation3 + $0x58] sm:$0xf] %vm422_vm3, %v656_v25  ;;  %v719_v29 = vpop.permute.xlu0 %718  ;;  %v2392_v30 = vcombine.low %v858_v26, %v860_v27  ;;  %v2883_v25 = vld [vmem:[%s3740_s3 + $0x28] sm:$0xff]  }
  0xf2   : > { %1137 = vmatprep.mubr.bf16.mxu0 %v2867_v28  ;;  %736 = vst.msk [vmem:[#allocation3 + $0x4c] sm:$0xf] %vm487_vm4, %v719_v29  ;;  %2730 = vmatpush3.bf16.msra.mxu1 %v2883_v25 }
  0xf3   : > { %1138 = vmatmul.mubr.bf16.gmra.mxu0 %v2392_v30 }
  0xf4   : > { %v478_v31 = vpop.permute.xlu1 %477 }
  0xf5   : > { %495 = vst.msk [vmem:[#allocation3 + $0x54] sm:$0xf] %vm487_vm4, %v478_v31  ;;  %v541_v32 = vpop.permute.xlu0 %540 }
  0xf6   : > { %559 = vst.msk [vmem:[#allocation3 + $0x48] sm:$0xf] %vm552_vm5, %v541_v32 }
  0xf8   : > { %v721_v33 = vpop.permute.xlu1 %720 }
  0xf9   : > { %737 = vst.msk [vmem:[#allocation3 + $0x58] sm:$0xf] %vm487_vm4, %v721_v33  ;;  %v783_v34 = vpop.permute.xlu0 %782  ;;  %v2884_v33 = vld [vmem:[%s3740_s3 + $0x60] sm:$0xff]  }
  0xfa   : > { %800 = vst.msk [vmem:[#allocation3 + $0x4c] sm:$0xf] %vm552_vm5, %v783_v34  ;;  %v2885_v34 = vld [vmem:[%s3740_s3 + $0x20] sm:$0xff]   ;;  %2731 = vmatprep.subr.bf16.mxu1 %v2884_v33 }
  0xfb   : > { %2732 = vmatpush3.bf16.msra.mxu1 %v2885_v34 }
  0xfc   : > { %v543_v35 = vpop.permute.xlu1 %542 }
  0xfd   : > { %560 = vst.msk [vmem:[#allocation3 + $0x54] sm:$0xf] %vm552_vm5, %v543_v35 }
 0x100   : > { %v785_v36 = vpop.permute.xlu1 %784 }
 0x101   : > { %801 = vst.msk [vmem:[#allocation3 + $0x58] sm:$0xf] %vm552_vm5, %v785_v36 }
 0x102   : > { %v3437_v51 = vpop.f32.mrf.mxu1 }
 0x104   : > { %v2871_v38 = vld [vmem:[#allocation3 + $0x48] ss:$12 sps:$4 sm:$0xff]   ;;  %v1188_v54 = vpop.f32.mrf.mxu1 }
 0x106   : > { %v3445_v60 = vpop.f32.mrf.mxu1 }
 0x108   : > { %v2869_v37 = vld [vmem:[#allocation3 + $0x4c] ss:$12 sps:$4 sm:$0xff]   ;;  %v1191_v1 = vpop.f32.mrf.mxu1 }
 0x109   : > { %1145 = vmatprep.mubr.bf16.mxu0 %v2869_v37 }
 0x10a   : > { %1146 = vmatmul.mubr.bf16.gmra.mxu0 %v2871_v38  ;;  %v2886_v38 = vld [vmem:[%s3740_s3 + $0x58] sm:$0xff]  }
 0x10b   : > { %2733 = vmatprep.subr.bf16.mxu1 %v2886_v38 }
 0x10c   : > { %2734 = vmatpush3.bf16.msra.mxu1 %v2887_v40 }
 0x10d   : > { %2735 = vmatprep.subr.bf16.mxu1 %v2888_v44 }
 0x110   : > { %2736 = vmatpush3.bf16.msra.mxu1 %v2889_v47 }
 0x111   : > { %2737 = vmatprep.subr.bf16.mxu1 %v2890_v49 }
 0x11e   : > { %v1337_v52 = vpop.permute.xlu0 %1336 }
 0x11f   : > { %1360 = vst.msk [vmem:[#allocation5] sm:$0xf] %vm422_vm3, %v1337_v52  ;;  %v2892_v52 = vld [vmem:[%s3740_s3 + $0x40] sm:$0xff]  }
 0x126   : > { %v1401_v58 = vpop.permute.xlu0 %1400 }
 0x127   : > { %1424 = vst.msk [vmem:[#allocation5] sm:$0xf] %vm487_vm4, %v1401_v58 }
 0x182   : > { %v2695_v53 = vpop.f32.mrf.mxu0 }
 0x184   : > { %v2696_v55 = vpop.f32.mrf.mxu0 }
 0x185   : > { %v2697_v57 = vadd.f32 %v2696_v55, %v2695_v53  ;;  %v2893_v53 = vld [vmem:[%s3740_s3] sm:$0xff]  }
 0x186   : > { %v2698_v59 = vpop.f32.mrf.mxu0 }
 0x187   : > { %v1124_v61 = vadd.f32 %v2697_v57, %v3443_v56 }
 0x188   : > { %v2699_v62 = vpop.f32.mrf.mxu0 }
 0x189   : > { %v2700_v63 = vadd.f32 %v2699_v62, %v2698_v59  ;;  %v1189_v0 = vadd.f32 %v1188_v54, %v1124_v61  ;;  %v3526_v62 = vpop.f32.mrf.mxu1 }
 0x18b   : > { %v1219_v2 = vmax.f32 %v1189_v0, 0.0  ;;  %v1127_v3 = vadd.f32 %v2700_v63, %v3443_v56  ;;  %v1204_v8 = vpop.f32.mrf.mxu1 }
 0x18d   : > { %1248 = vst.msk [vmem:[#allocation4 + $0x11] sm:$0xff] %vm286_vm0, %v1219_v2  ;;  %v1192_v4 = vadd.f32 %v1191_v1, %v1127_v3 }
 0x18f   : > { %v1220_v9 = vmax.f32 %v1192_v4, 0.0 }
 0x191   : > { %1249 = vst.msk [vmem:[#allocation4 + $0x21] sm:$0xff] %vm286_vm0, %v1220_v9 }
 0x194   : > { %v1544_v18 = vld [vmem:[#allocation4 + $0x12] sm:$0xff] }
 0x195   : > { %v1305_v19 = vld [vmem:[#allocation4 + $0x11] sm:$0xff]  ;;  %v2646_v21 = vpack.c.bf16 %v1544_v18, %v1544_v18 }
 0x196   : > { %v1432_v20 = vld [vmem:[#allocation4 + $0x10] sm:$0xff]  ;;  %v2615_v22 = vpack.c.bf16 %v1305_v19, %v1305_v19  ;;  %v2782_v19 = vpop.f32.mrf.mxu1 }
 0x197   : > { %v2630_v23 = vpack.c.bf16 %v1432_v20, %v1432_v20  ;;  %1576 = vrot.lane.b32.xlu0 %v2646_v21, %s2971_s9 }
 0x198   : > { %1338 = vrot.lane.b32.xlu1 %v2615_v22, %s2971_s9  ;;  %1536 = vst.msk [vmem:[#allocation5 + $0x4] sm:$0xf] %vm357_vm2, %v2615_v22  ;;  %v1737_v26 = vld [vmem:[#allocation4 + $0x22] sm:$0xff]  ;;  %v1207_v25 = vpop.f32.mrf.mxu1 }
 0x199   : > { %1297 = vst.msk [vmem:[#allocation5 + $0xc] sm:$0xf] %vm357_vm2, %v2630_v23  ;;  %v1609_v27 = vld [vmem:[#allocation4 + $0x20] sm:$0xff]  ;;  %v2670_v29 = vpack.c.bf16 %v1737_v26, %v1737_v26 }
 0x19a   : > { %v1673_v28 = vld [vmem:[#allocation4 + $0x21] sm:$0xff]  ;;  %v2654_v30 = vpack.c.bf16 %v1609_v27, %v1609_v27 }
 0x19b   : > { %v2662_v31 = vpack.c.bf16 %v1673_v28, %v1673_v28  ;;  %v2701_v32 = vpop.f32.mrf.mxu0  ;;  %1777 = vst.msk [vmem:[#allocation5 + $0x8] sm:$0xf] %vm357_vm2, %v2670_v29  ;;  %1464 = vrot.lane.b32.xlu0 %v2630_v23, %s2973_s17 }
 0x19c   : > { %1402 = vrot.lane.b32.xlu1 %v2646_v21, %s2972_s21  ;;  %1298 = vst.msk [vmem:[#allocation5 + $0x18] sm:$0xf] %vm357_vm2, %v2654_v30 }
 0x19d   : > { %1537 = vst.msk [vmem:[#allocation5 + $0x10] sm:$0xf] %vm357_vm2, %v2662_v31  ;;  %v2702_v35 = vpop.f32.mrf.mxu0 }
 0x19e   : > { %v2703_v36 = vadd.f32 %v2702_v35, %v2701_v32 }
 0x19f   : > { %v2704_v37 = vpop.f32.mrf.mxu0  ;;  %1641 = vrot.lane.b32.xlu0 %v2654_v30, %s2972_s21 }
 0x1a0   : > { %v1132_v39 = vadd.f32 %v2703_v36, %v3443_v56  ;;  %1578 = vrot.lane.b32.xlu1 %v2670_v29, %s2971_s9 }
 0x1a1   : > { %v2705_v41 = vpop.f32.mrf.mxu0 }
 0x1a2   : > { %v1197_v42 = vadd.f32 %v3437_v51, %v1132_v39  ;;  %v2706_v43 = vadd.f32 %v2705_v41, %v2704_v37  ;;  %v2891_v51 = vld [vmem:[%s3740_s3 + $0x8] sm:$0xff]  }
 0x1a3   : > { %1705 = vrot.lane.b32.xlu0 %v2662_v31, %s2973_s17  ;;  %2738 = vmatpush3.bf16.msra.mxu1 %v2891_v51 }
 0x1a4   : > { %v1221_v45 = vmax.f32 %v1197_v42, 0.0  ;;  %v1135_v46 = vadd.f32 %v2706_v43, %v3443_v56  ;;  %1466 = vrot.lane.b32.xlu1 %v2654_v30, %s2973_s17  ;;  %2739 = vmatprep.subr.bf16.mxu1 %v2892_v52 }
 0x1a6   : > { %1250 = vst.msk [vmem:[#allocation4 + $0x31] sm:$0xff] %vm286_vm0, %v1221_v45  ;;  %v1200_v48 = vadd.f32 %v3445_v60, %v1135_v46 }
 0x1a7   : > { %1340 = vrot.lane.b32.xlu0 %v2662_v31, %s2971_s9  ;;  %2740 = vmatpush3.bf16.msra.mxu1 %v2893_v53 }
 0x1a8   : > { %v1222_v50 = vmax.f32 %v1200_v48, 0.0 }
 0x1aa   : > { %1251 = vst.msk [vmem:[#allocation4 + $0x41] sm:$0xff] %vm286_vm0, %v1222_v50 }
 0x1ab   : > { %1404 = vrot.lane.b32.xlu0 %v2670_v29, %s2972_s21 }
 0x1ad   : > { %v1546_v54 = vld [vmem:[#allocation4 + $0x32] sm:$0xff] }
 0x1ae   : > { %v1610_v55 = vld [vmem:[#allocation4 + $0x30] sm:$0xff]  ;;  %v2648_v58 = vpack.c.bf16 %v1546_v54, %v1546_v54 }
 0x1af   : > { %v1674_v57 = vld [vmem:[#allocation4 + $0x31] sm:$0xff]  ;;  %v2655_v59 = vpack.c.bf16 %v1610_v55, %v1610_v55 }
 0x1b0   : > { %v2663_v60 = vpack.c.bf16 %v1674_v57, %v1674_v57  ;;  %1580 = vrot.lane.b32.xlu0 %v2648_v58, %s2971_s9  ;;  %1778 = vst.msk [vmem:[#allocation5 + $0x14] sm:$0xf] %vm357_vm2, %v2648_v58 }
 0x1b1   : > { %1643 = vrot.lane.b32.xlu1 %v2655_v59, %s2972_s21  ;;  %1299 = vst.msk [vmem:[#allocation5 + $0x24] sm:$0xf] %vm357_vm2, %v2655_v59  ;;  %v1739_v61 = vld [vmem:[#allocation4 + $0x42] sm:$0xff] }
 0x1b2   : > { %1538 = vst.msk [vmem:[#allocation5 + $0x1c] sm:$0xf] %vm357_vm2, %v2663_v60  ;;  %v1611_v63 = vld [vmem:[#allocation4 + $0x40] sm:$0xff]  ;;  %v2672_v1 = vpack.c.bf16 %v1739_v61, %v1739_v61 }
 0x1b3   : > { %v1675_v0 = vld [vmem:[#allocation4 + $0x41] sm:$0xff]  ;;  %v2656_v2 = vpack.c.bf16 %v1611_v63, %v1611_v63  ;;  %v2707_v4 = vpop.f32.mrf.mxu0 }
 0x1b4   : > { %v2664_v3 = vpack.c.bf16 %v1675_v0, %v1675_v0  ;;  %1779 = vst.msk [vmem:[#allocation5 + $0x20] sm:$0xf] %vm357_vm2, %v2672_v1  ;;  %1468 = vrot.lane.b32.xlu0 %v2655_v59, %s2973_s17 }
 0x1b5   : > { %1707 = vrot.lane.b32.xlu1 %v2663_v60, %s2973_s17  ;;  %1300 = vst.msk [vmem:[#allocation5 + $0x30] sm:$0xf] %vm357_vm2, %v2656_v2  ;;  %v2708_v9 = vpop.f32.mrf.mxu0 }
 0x1b6   : > { %1539 = vst.msk [vmem:[#allocation5 + $0x28] sm:$0xf] %vm357_vm2, %v2664_v3  ;;  %v2709_v11 = vadd.f32 %v2708_v9, %v2707_v4 }
 0x1b7   : > { %v2710_v16 = vpop.f32.mrf.mxu0  ;;  %v2872_v17 = vld [vmem:[#allocation5 + $0x8] ss:$12 sps:$4 sm:$0xff]  }
 0x1b8   : > { %v1140_v18 = vadd.f32 %v2709_v11, %v3443_v56  ;;  %1645 = vrot.lane.b32.xlu0 %v2656_v2, %s2972_s21  ;;  %2787 = vmatprep.mubr.msk.bf16.mxu0 %vm286_vm0, %v2872_v17 }
 0x1b9   : > { %1342 = vrot.lane.b32.xlu1 %v2663_v60, %s2971_s9  ;;  %v2711_v20 = vpop.f32.mrf.mxu0 }
 0x1ba   : > { %v1205_v21 = vadd.f32 %v1204_v8, %v1140_v18  ;;  %v2712_v22 = vadd.f32 %v2711_v20, %v2710_v16  ;;  %v3588_v8 = vpop.permute.xlu1 %1655 }
 0x1bc   : > { %v1223_v23 = vmax.f32 %v1205_v21, 0.0  ;;  %v1143_v24 = vadd.f32 %v2712_v22, %v3443_v56  ;;  %1709 = vrot.lane.b32.xlu0 %v2664_v3, %s2973_s17 }
 0x1bd   : > { %1406 = vrot.lane.b32.xlu1 %v2648_v58, %s2972_s21 }
 0x1be   : > { %1252 = vst.msk [vmem:[#allocation4 + $0x51] sm:$0xff] %vm286_vm0, %v1223_v23  ;;  %v1208_v26 = vadd.f32 %v1207_v25, %v1143_v24 }
 0x1c0   : > { %v1224_v27 = vmax.f32 %v1208_v26, 0.0  ;;  %1344 = vrot.lane.b32.xlu0 %v2664_v3, %s2971_s9  ;;  %v1680_v3 = vld [vmem:[#allocation4 + $0x91] sm:$0xff] }
 0x1c1   : > { %1582 = vrot.lane.b32.xlu1 %v2672_v1, %s2971_s9  ;;  %v2669_v4 = vpack.c.bf16 %v1680_v3, %v1680_v3 }
 0x1c2   : > { %1253 = vst.msk [vmem:[#allocation4 + $0x61] sm:$0xff] %vm286_vm0, %v1224_v27 }
 0x1c4   : > { %1408 = vrot.lane.b32.xlu0 %v2672_v1, %s2972_s21 }
 0x1c5   : > { %1470 = vrot.lane.b32.xlu1 %v2656_v2, %s2973_s17  ;;  %v1740_v28 = vld [vmem:[#allocation4 + $0x52] sm:$0xff] }
 0x1c6   : > { %v1612_v29 = vld [vmem:[#allocation4 + $0x50] sm:$0xff]  ;;  %v2673_v31 = vpack.c.bf16 %v1740_v28, %v1740_v28 }
 0x1c7   : > { %v1676_v30 = vld [vmem:[#allocation4 + $0x51] sm:$0xff]  ;;  %v2657_v32 = vpack.c.bf16 %v1612_v29, %v1612_v29 }
 0x1c8   : > { %v2665_v33 = vpack.c.bf16 %v1676_v30, %v1676_v30  ;;  %1780 = vst.msk [vmem:[#allocation5 + $0x2c] sm:$0xf] %vm357_vm2, %v2673_v31  ;;  %1584 = vrot.lane.b32.xlu0 %v2673_v31, %s2971_s9 }
 0x1c9   : > { %1647 = vrot.lane.b32.xlu1 %v2657_v32, %s2972_s21  ;;  %1301 = vst.msk [vmem:[#allocation5 + $0x3c] sm:$0xf] %vm357_vm2, %v2657_v32  ;;  %v1613_v34 = vld [vmem:[#allocation4 + $0x60] sm:$0xff] }
 0x1ca   : > { %1540 = vst.msk [vmem:[#allocation5 + $0x34] sm:$0xf] %vm357_vm2, %v2665_v33  ;;  %v1677_v35 = vld [vmem:[#allocation4 + $0x61] sm:$0xff]  ;;  %v2658_v37 = vpack.c.bf16 %v1613_v34, %v1613_v34  ;;  %v2713_v40 = vpop.f32.mrf.mxu0 }
 0x1cb   : > { %v1549_v36 = vld [vmem:[#allocation4 + $0x62] sm:$0xff]  ;;  %v2666_v38 = vpack.c.bf16 %v1677_v35, %v1677_v35 }
 0x1cc   : > { %v2651_v39 = vpack.c.bf16 %v1549_v36, %v1549_v36  ;;  %1472 = vrot.lane.b32.xlu0 %v2657_v32, %s2973_s17  ;;  %1302 = vst.msk [vmem:[#allocation5 + $0x48] sm:$0xf] %vm357_vm2, %v2658_v37  ;;  %v2714_v41 = vpop.f32.mrf.mxu0 }
 0x1cd   : > { %1711 = vrot.lane.b32.xlu1 %v2665_v33, %s2973_s17  ;;  %1541 = vst.msk [vmem:[#allocation5 + $0x40] sm:$0xf] %vm357_vm2, %v2666_v38  ;;  %v2715_v42 = vadd.f32 %v2714_v41, %v2713_v40 }
 0x1ce   : > { %1781 = vst.msk [vmem:[#allocation5 + $0x38] sm:$0xf] %vm357_vm2, %v2651_v39  ;;  %v2716_v43 = vpop.f32.mrf.mxu0 }
 0x1cf   : > { %v2875_v44 = vld [vmem:[#allocation5 + $0x20] ss:$12 sps:$4 sm:$0xff]   ;;  %v1148_v45 = vadd.f32 %v2715_v42, %v3443_v56 }
 0x1d0   : > { %1649 = vrot.lane.b32.xlu0 %v2658_v37, %s2972_s21  ;;  %v2717_v46 = vpop.f32.mrf.mxu0  ;;  %2788 = vmatmul.mubr.msk.bf16.vlgmr.msra.gmra.mxu0 %vm286_vm0, %v2875_v44 }
 0x1d1   : > { %1346 = vrot.lane.b32.xlu1 %v2665_v33, %s2971_s9  ;;  %v1213_v47 = vadd.f32 %v3526_v62, %v1148_v45  ;;  %v2718_v48 = vadd.f32 %v2717_v46, %v2716_v43 }
 0x1d3   : > { %v1225_v49 = vmax.f32 %v1213_v47, 0.0  ;;  %v1151_v50 = vadd.f32 %v2718_v48, %v3443_v56 }
 0x1d4   : > { %1713 = vrot.lane.b32.xlu0 %v2666_v38, %s2973_s17 }
 0x1d5   : > { %1410 = vrot.lane.b32.xlu1 %v2673_v31, %s2972_s21  ;;  %1254 = vst.msk [vmem:[#allocation4 + $0x71] sm:$0xff] %vm286_vm0, %v1225_v49  ;;  %v1216_v51 = vadd.f32 %v2782_v19, %v1151_v50 }
 0x1d7   : > { %v1226_v52 = vmax.f32 %v1216_v51, 0.0 }
 0x1d8   : > { %1348 = vrot.lane.b32.xlu0 %v2666_v38, %s2971_s9 }
 0x1d9   : > { %1586 = vrot.lane.b32.xlu1 %v2651_v39, %s2971_s9  ;;  %1255 = vst.msk [vmem:[#allocation4 + $0x81] sm:$0xff] %vm286_vm0, %v1226_v52 }
 0x1dc   : > { %1412 = vrot.lane.b32.xlu0 %v2651_v39, %s2972_s21  ;;  %v1550_v53 = vld [vmem:[#allocation4 + $0x72] sm:$0xff] }
 0x1dd   : > { %1474 = vrot.lane.b32.xlu1 %v2658_v37, %s2973_s17  ;;  %v1614_v56 = vld [vmem:[#allocation4 + $0x70] sm:$0xff]  ;;  %v2652_v55 = vpack.c.bf16 %v1550_v53, %v1550_v53 }
 0x1de   : > { %v1678_v54 = vld [vmem:[#allocation4 + $0x71] sm:$0xff]  ;;  %v2659_v57 = vpack.c.bf16 %v1614_v56, %v1614_v56 }
 0x1df   : > { %v2667_v58 = vpack.c.bf16 %v1678_v54, %v1678_v54  ;;  %1782 = vst.msk [vmem:[#allocation5 + $0x44] sm:$0xf] %vm357_vm2, %v2652_v55 }
 0x1e0   : > { %1588 = vrot.lane.b32.xlu0 %v2652_v55, %s2971_s9  ;;  %1303 = vst.msk [vmem:[#allocation5 + $0x54] sm:$0xf] %vm357_vm2, %v2659_v57  ;;  %v1679_v59 = vld [vmem:[#allocation4 + $0x81] sm:$0xff] }
 0x1e1   : > { %1651 = vrot.lane.b32.xlu1 %v2659_v57, %s2972_s21  ;;  %1542 = vst.msk [vmem:[#allocation5 + $0x4c] sm:$0xf] %vm357_vm2, %v2667_v58  ;;  %v1743_v60 = vld [vmem:[#allocation4 + $0x82] sm:$0xff]  ;;  %v2668_v61 = vpack.c.bf16 %v1679_v59, %v1679_v59 }
 0x1e2   : > { %v2676_v62 = vpack.c.bf16 %v1743_v60, %v1743_v60  ;;  %v1615_v63 = vld [vmem:[#allocation4 + $0x80] sm:$0xff] }
 0x1e3   : > { %1543 = vst.msk [vmem:[#allocation5 + $0x58] sm:$0xf] %vm357_vm2, %v2668_v61  ;;  %v2660_v0 = vpack.c.bf16 %v1615_v63, %v1615_v63 }
 0x1e4   : > { %1476 = vrot.lane.b32.xlu0 %v2659_v57, %s2973_s17  ;;  %1783 = vst.msk [vmem:[#allocation5 + $0x50] sm:$0xf] %vm357_vm2, %v2676_v62 }
 0x1e5   : > { %1715 = vrot.lane.b32.xlu1 %v2667_v58, %s2973_s17 }
 0x1e6   : > { %v2876_v1 = vld [vmem:[#allocation5 + $0x38] ss:$12 sps:$4 sm:$0xff]  }
 0x1e7   : > { %2791 = vmatprep.mubr.msk.bf16.mxu0 %vm286_vm0, %v2876_v1 }
 0x1e8   : > { %1653 = vrot.lane.b32.xlu0 %v2660_v0, %s2972_s21 }
 0x1e9   : > { %1350 = vrot.lane.b32.xlu1 %v2667_v58, %s2971_s9 }
 0x1eb   : > { %v2877_v2 = vld [vmem:[#allocation5 + $0x50] ss:$12 sps:$4 sm:$0xff]  }
 0x1ec   : > { %1717 = vrot.lane.b32.xlu0 %v2668_v61, %s2973_s17  ;;  %2792 = vmatmul.mubr.msk.bf16.gmra.mxu0 %vm286_vm0, %v2877_v2 }
 0x1ed   : > { %1414 = vrot.lane.b32.xlu1 %v2652_v55, %s2972_s21  ;;  %s2974_s21 = smov [#allocation6]  }
 0x1f1   : > { %1590 = vrot.lane.b32.xlu1 %v2676_v62, %s2971_s9  ;;  %s2908_s9 = scalar_lea.vmem %s3685_s20, 1024 }
 0x1f2   : > { %p2909_p11 = scmp.ne.s32.totalorder %s3685_s20, %s2908_s9 }
 0x1f4   : > { %p2910_p12 = pnand %p2909_p11, %p3055_p5 }
 0x1f5   : > { %1478 = vrot.lane.b32.xlu1 %v2660_v0, %s2973_s17 }
 0x1f6   : > { %p2911_p13 = pneg %p2910_p12 }
 0x1f9   : > { %1719 = vrot.lane.b32.xlu1 %v2669_v4, %s2973_s17  ;;  %s2912_s17 = sshll.u32 %s2974_s21, 4  ;;  %s2913_s17 = int_to_ptr.vmem [resolvable:$false] %s2912_s17 }
 0x1fa   : > { %s2914_s8 = scalar_lea.vmem %s2913_s17, 2048  ;;  %p2915_p0 = scmp.lt.s32.totalorder %s3685_s20, %s2913_s17 }
 0x1fb   : > { %p2916_p1 = scmp.lt.s32.totalorder %s2914_s8, %s2908_s9 }
 0x1fd   : > { %p2917_p2 = por %p2916_p1, %p2915_p0 }
 0x1ff   : > { %p2918_p3 = pnand %p2917_p2, %p2911_p13 }
 0x209   : > { %v1577_v9 = vpop.permute.xlu0 %1576 }
 0x20a   : > { %v1339_v11 = vpop.permute.xlu1 %1338  ;;  %1600 = vst.msk [vmem:[#allocation5 + $0x4] sm:$0xf] %vm422_vm3, %v1577_v9 }
 0x20b   : > { %1361 = vst.msk [vmem:[#allocation5 + $0xc] sm:$0xf] %vm422_vm3, %v1339_v11 }
 0x20d   : > { %v1465_v16 = vpop.permute.xlu0 %1464 }
 0x20e   : > { %v1403_v17 = vpop.permute.xlu1 %1402  ;;  %1488 = vst.msk [vmem:[#allocation5] sm:$0xf] %vm552_vm5, %v1465_v16 }
 0x20f   : > { %1425 = vst.msk [vmem:[#allocation5 + $0xc] sm:$0xf] %vm487_vm4, %v1403_v17 }
 0x211   : > { %v1642_v18 = vpop.permute.xlu0 %1641 }
 0x212   : > { %v1579_v19 = vpop.permute.xlu1 %1578  ;;  %1665 = vst.msk [vmem:[#allocation5 + $0x4] sm:$0xf] %vm487_vm4, %v1642_v18 }
 0x213   : > { %1601 = vst.msk [vmem:[#allocation5 + $0x10] sm:$0xf] %vm422_vm3, %v1579_v19 }
 0x215   : > { %v1706_v20 = vpop.permute.xlu0 %1705 }
 0x216   : > { %v1467_v21 = vpop.permute.xlu1 %1466  ;;  %1729 = vst.msk [vmem:[#allocation5 + $0x4] sm:$0xf] %vm552_vm5, %v1706_v20 }
 0x217   : > { %1489 = vst.msk [vmem:[#allocation5 + $0xc] sm:$0xf] %vm552_vm5, %v1467_v21 }
 0x219   : > { %v1341_v22 = vpop.permute.xlu0 %1340 }
 0x21a   : > { %1362 = vst.msk [vmem:[#allocation5 + $0x18] sm:$0xf] %vm422_vm3, %v1341_v22 }
 0x21d   : > { %v1405_v23 = vpop.permute.xlu0 %1404 }
 0x21e   : > { %1426 = vst.msk [vmem:[#allocation5 + $0x18] sm:$0xf] %vm487_vm4, %v1405_v23  ;;  %v2894_v32 = vld [vmem:[#allocation5] ss:$12 sps:$4 sm:$0xff]  }
 0x222   : > { %v1581_v24 = vpop.permute.xlu0 %1580 }
 0x223   : > { %v1644_v25 = vpop.permute.xlu1 %1643  ;;  %1602 = vst.msk [vmem:[#allocation5 + $0x1c] sm:$0xf] %vm422_vm3, %v1581_v24 }
 0x224   : > { %1666 = vst.msk [vmem:[#allocation5 + $0x10] sm:$0xf] %vm487_vm4, %v1644_v25 }
 0x226   : > { %v1469_v26 = vpop.permute.xlu0 %1468 }
 0x227   : > { %v1708_v27 = vpop.permute.xlu1 %1707  ;;  %1490 = vst.msk [vmem:[#allocation5 + $0x18] sm:$0xf] %vm552_vm5, %v1469_v26 }
 0x228   : > { %1730 = vst.msk [vmem:[#allocation5 + $0x10] sm:$0xf] %vm552_vm5, %v1708_v27 }
 0x22a   : > { %v1646_v28 = vpop.permute.xlu0 %1645 }
 0x22b   : > { %v1343_v29 = vpop.permute.xlu1 %1342  ;;  %1667 = vst.msk [vmem:[#allocation5 + $0x1c] sm:$0xf] %vm487_vm4, %v1646_v28 }
 0x22c   : > { %1363 = vst.msk [vmem:[#allocation5 + $0x24] sm:$0xf] %vm422_vm3, %v1343_v29 }
 0x22e   : > { %v1710_v30 = vpop.permute.xlu0 %1709 }
 0x22f   : > { %v1407_v31 = vpop.permute.xlu1 %1406  ;;  %v2896_v33 = vld [vmem:[#allocation5 + $0x4] ss:$12 sps:$4 sm:$0xff]   ;;  %1731 = vst.msk [vmem:[#allocation5 + $0x1c] sm:$0xf] %vm552_vm5, %v1710_v30 }
 0x230   : > { %1427 = vst.msk [vmem:[#allocation5 + $0x24] sm:$0xf] %vm487_vm4, %v1407_v31  ;;  %2056 = vmatprep.mubr.bf16.mxu1 %v2896_v33 }
 0x231   : > { %2057 = vmatmul.mubr.bf16.vlgmr.msra.gmra.mxu1 %v2894_v32 }
 0x232   : > { %v1345_v34 = vpop.permute.xlu0 %1344 }
 0x233   : > { %v1583_v35 = vpop.permute.xlu1 %1582  ;;  %1364 = vst.msk [vmem:[#allocation5 + $0x30] sm:$0xf] %vm422_vm3, %v1345_v34  ;;  %v2492_v34 = vld [vmem:[%s3741_s4] ss:$0 sm:$0xff] }
 0x234   : > { %1603 = vst.msk [vmem:[#allocation5 + $0x28] sm:$0xf] %vm422_vm3, %v1583_v35 }
 0x236   : > { %v1409_v36 = vpop.permute.xlu0 %1408  ;;  %v1789_v46 = vld [vmem:[#allocation5 + $0x18] sm:$0xff] }
 0x237   : > { %v1471_v37 = vpop.permute.xlu1 %1470  ;;  %1428 = vst.msk [vmem:[#allocation5 + $0x30] sm:$0xf] %vm487_vm4, %v1409_v36 }
 0x238   : > { %1491 = vst.msk [vmem:[#allocation5 + $0x24] sm:$0xf] %vm552_vm5, %v1471_v37 }
 0x23a   : > { %v1585_v38 = vpop.permute.xlu0 %1584 }
 0x23b   : > { %v1648_v39 = vpop.permute.xlu1 %1647  ;;  %1604 = vst.msk [vmem:[#allocation5 + $0x34] sm:$0xf] %vm422_vm3, %v1585_v38 }
 0x23c   : > { %1668 = vst.msk [vmem:[#allocation5 + $0x28] sm:$0xf] %vm487_vm4, %v1648_v39 }
 0x23e   : > { %v1473_v40 = vpop.permute.xlu0 %1472 }
 0x23f   : > { %v1712_v41 = vpop.permute.xlu1 %1711  ;;  %1492 = vst.msk [vmem:[#allocation5 + $0x30] sm:$0xf] %vm552_vm5, %v1473_v40 }
 0x240   : > { %1732 = vst.msk [vmem:[#allocation5 + $0x28] sm:$0xf] %vm552_vm5, %v1712_v41 }
 0x242   : > { %v1650_v42 = vpop.permute.xlu0 %1649 }
 0x243   : > { %v1347_v43 = vpop.permute.xlu1 %1346  ;;  %1669 = vst.msk [vmem:[#allocation5 + $0x34] sm:$0xf] %vm487_vm4, %v1650_v42 }
 0x244   : > { %1365 = vst.msk [vmem:[#allocation5 + $0x3c] sm:$0xf] %vm422_vm3, %v1347_v43 }
 0x246   : > { %v1714_v44 = vpop.permute.xlu0 %1713 }
 0x247   : > { %v1411_v45 = vpop.permute.xlu1 %1410  ;;  %v1791_v47 = vld [vmem:[#allocation5 + $0x24] sm:$0xff]  ;;  %1733 = vst.msk [vmem:[#allocation5 + $0x34] sm:$0xf] %vm552_vm5, %v1714_v44 }
 0x248   : > { %v2897_v48 = vld [vmem:[#allocation5 + $0x1c] ss:$12 sps:$4 sm:$0xff]   ;;  %1429 = vst.msk [vmem:[#allocation5 + $0x3c] sm:$0xf] %vm487_vm4, %v1411_v45  ;;  %v2496_v49 = vcombine.low %v1789_v46, %v1791_v47 }
 0x249   : > { %2064 = vmatprep.mubr.bf16.mxu1 %v2897_v48 }
 0x24a   : > { %2065 = vmatmul.mubr.bf16.gmra.mxu1 %v2496_v49  ;;  %v1349_v50 = vpop.permute.xlu0 %1348 }
 0x24b   : > { %v1587_v51 = vpop.permute.xlu1 %1586  ;;  %1366 = vst.msk [vmem:[#allocation5 + $0x48] sm:$0xf] %vm422_vm3, %v1349_v50 }
 0x24c   : > { %1605 = vst.msk [vmem:[#allocation5 + $0x40] sm:$0xf] %vm422_vm3, %v1587_v51 }
 0x24e   : > { %v1413_v52 = vpop.permute.xlu0 %1412  ;;  %v1793_v62 = vld [vmem:[#allocation5 + $0x30] sm:$0xff] }
 0x24f   : > { %v1475_v53 = vpop.permute.xlu1 %1474  ;;  %1430 = vst.msk [vmem:[#allocation5 + $0x48] sm:$0xf] %vm487_vm4, %v1413_v52 }
 0x250   : > { %1493 = vst.msk [vmem:[#allocation5 + $0x3c] sm:$0xf] %vm552_vm5, %v1475_v53 }
 0x252   : > { %v1589_v56 = vpop.permute.xlu0 %1588 }
 0x253   : > { %v1652_v54 = vpop.permute.xlu1 %1651  ;;  %1606 = vst.msk [vmem:[#allocation5 + $0x4c] sm:$0xf] %vm422_vm3, %v1589_v56 }
 0x254   : > { %1670 = vst.msk [vmem:[#allocation5 + $0x40] sm:$0xf] %vm487_vm4, %v1652_v54 }
 0x256   : > { %v1477_v55 = vpop.permute.xlu0 %1476 }
 0x257   : > { %v1716_v57 = vpop.permute.xlu1 %1715  ;;  %1494 = vst.msk [vmem:[#allocation5 + $0x48] sm:$0xf] %vm552_vm5, %v1477_v55 }
 0x258   : > { %1734 = vst.msk [vmem:[#allocation5 + $0x40] sm:$0xf] %vm552_vm5, %v1716_v57 }
 0x25a   : > { %v1654_v58 = vpop.permute.xlu0 %1653 }
 0x25b   : > { %v1351_v59 = vpop.permute.xlu1 %1350  ;;  %1671 = vst.msk [vmem:[#allocation5 + $0x4c] sm:$0xf] %vm487_vm4, %v1654_v58 }
 0x25c   : > { %1367 = vst.msk [vmem:[#allocation5 + $0x54] sm:$0xf] %vm422_vm3, %v1351_v59 }
 0x25e   : > { %v1718_v60 = vpop.permute.xlu0 %1717 }
 0x25f   : > { %v1415_v61 = vpop.permute.xlu1 %1414  ;;  %v1795_v63 = vld [vmem:[#allocation5 + $0x3c] sm:$0xff]  ;;  %1735 = vst.msk [vmem:[#allocation5 + $0x4c] sm:$0xf] %vm552_vm5, %v1718_v60 }
 0x260   : > { %v2899_v0 = vld [vmem:[#allocation5 + $0x34] ss:$12 sps:$4 sm:$0xff]   ;;  %1431 = vst.msk [vmem:[#allocation5 + $0x54] sm:$0xf] %vm487_vm4, %v1415_v61  ;;  %v2499_v1 = vcombine.low %v1793_v62, %v1795_v63 }
 0x261   : > { %2072 = vmatprep.mubr.bf16.mxu1 %v2899_v0 }
 0x262   : > { %2073 = vmatmul.mubr.bf16.gmra.mxu1 %v2499_v1 }
 0x263   : > { %v1591_v2 = vpop.permute.xlu1 %1590 }
 0x264   : > { %1607 = vst.msk [vmem:[#allocation5 + $0x58] sm:$0xf] %vm422_vm3, %v1591_v2 }
 0x265   : > { %1672 = vst.msk [vmem:[#allocation5 + $0x58] sm:$0xf] %vm487_vm4, %v3588_v8 }
 0x267   : > { %v1479_v3 = vpop.permute.xlu1 %1478 }
 0x268   : > { %1495 = vst.msk [vmem:[#allocation5 + $0x54] sm:$0xf] %vm552_vm5, %v1479_v3 }
 0x26b   : > { %v1720_v4 = vpop.permute.xlu1 %1719 }
 0x26c   : > { %1736 = vst.msk [vmem:[#allocation5 + $0x58] sm:$0xf] %vm552_vm5, %v1720_v4 }
 0x26f   : > { %v2903_v11 = vld [vmem:[#allocation5 + $0x48] ss:$12 sps:$4 sm:$0xff]  }
 0x273   : > { %v2901_v9 = vld [vmem:[#allocation5 + $0x4c] ss:$12 sps:$4 sm:$0xff]  }
 0x274   : > { %2080 = vmatprep.mubr.bf16.mxu1 %v2901_v9 }
 0x275   : > { %2081 = vmatmul.mubr.bf16.gmra.mxu1 %v2903_v11 }
 0x290   : > { %v2789_v23 = vpop.f32.mrf.mxu0 }
 0x292   : > { %v2123_v8 = vpop.f32.mrf.mxu0 }
 0x294   : > { %v2790_v26 = vpop.f32.mrf.mxu0 }
 0x296   : > { %v2126_v29 = vpop.f32.mrf.mxu0 }
 0x2ac   : > { %v2793_v33 = vpop.f32.mrf.mxu0 }
 0x2ae   : > { %v2139_v41 = vpop.f32.mrf.mxu0 }
 0x2b0   : > { %v2794_v48 = vpop.f32.mrf.mxu0 }
 0x2b2   : > { %v2142_v55 = vpop.f32.mrf.mxu0 }
 0x2f1   : > { %v2741_v16 = vpop.f32.mrf.mxu1 }
 0x2f3   : > { %v2742_v17 = vpop.f32.mrf.mxu1 }
 0x2f4   : > { %v2743_v31 = vadd.f32 %v2742_v17, %v2741_v16 }
 0x2f5   : > { %v2744_v18 = vpop.f32.mrf.mxu1 }
 0x2f6   : > { %v2059_v38 = vadd.f32 %v2743_v31, %v2492_v34 }
 0x2f7   : > { %v2745_v19 = vpop.f32.mrf.mxu1 }
 0x2f8   : > { %v2746_v28 = vadd.f32 %v2745_v19, %v2744_v18  ;;  %v3642_v45 = vadd.f32 %v2123_v8, %v2059_v38 }
 0x2fa   : > { %v2062_v35 = vadd.f32 %v2746_v28, %v2492_v34  ;;  %v2154_v53 = vsel %vm286_vm0, %v3642_v45, 0.0 }
 0x2fc   : > { %v3640_v42 = vadd.f32 %v2126_v29, %v2062_v35  ;;  %v2177_v29 = vld [vmem:[%s3742_s5] sm:$0x3] }
 0x2fe   : > { %v2155_v49 = vsel %vm286_vm0, %v3640_v42, 0.0 }
 0x2ff   : > { %v2156_v57 = vadd.f32 %v2155_v49, %v2154_v53 }
 0x30a   : > { %v2747_v20 = vpop.f32.mrf.mxu1 }
 0x30c   : > { %v2748_v21 = vpop.f32.mrf.mxu1 }
 0x30d   : > { %v2749_v32 = vadd.f32 %v2748_v21, %v2747_v20 }
 0x30e   : > { %v2750_v22 = vpop.f32.mrf.mxu1 }
 0x30f   : > { %v2067_v39 = vadd.f32 %v2749_v32, %v2492_v34 }
 0x310   : > { %v2751_v24 = vpop.f32.mrf.mxu1 }
 0x311   : > { %v2752_v36 = vadd.f32 %v2751_v24, %v2750_v22  ;;  %v3644_v46 = vadd.f32 %v2789_v23, %v2067_v39 }
 0x313   : > { %v2070_v43 = vadd.f32 %v2752_v36, %v2492_v34  ;;  %v2157_v56 = vsel %vm286_vm0, %v3644_v46, 0.0 }
 0x314   : > { %v2158_v62 = vadd.f32 %v2157_v56, %v2156_v57 }
 0x315   : > { %v2135_v50 = vadd.f32 %v2790_v26, %v2070_v43 }
 0x317   : > { %v2159_v59 = vsel %vm286_vm0, %v2135_v50, 0.0 }
 0x318   : > { %v2160_v2 = vadd.f32 %v2159_v59, %v2158_v62 }
 0x322   : > { %v2753_v25 = vpop.f32.mrf.mxu1 }
 0x324   : > { %v2754_v27 = vpop.f32.mrf.mxu1 }
 0x325   : > { %v2755_v40 = vadd.f32 %v2754_v27, %v2753_v25 }
 0x326   : > { %v2756_v30 = vpop.f32.mrf.mxu1 }
 0x327   : > { %v2075_v47 = vadd.f32 %v2755_v40, %v2492_v34 }
 0x328   : > { %v2757_v37 = vpop.f32.mrf.mxu1 }
 0x329   : > { %v2758_v44 = vadd.f32 %v2757_v37, %v2756_v30  ;;  %v2140_v54 = vadd.f32 %v2139_v41, %v2075_v47 }
 0x32b   : > { %v2078_v51 = vadd.f32 %v2758_v44, %v2492_v34  ;;  %v2161_v0 = vsel %vm286_vm0, %v2140_v54, 0.0 }
 0x32c   : > { %v2162_v16 = vadd.f32 %v2161_v0, %v2160_v2 }
 0x32d   : > { %v2143_v60 = vadd.f32 %v2142_v55, %v2078_v51 }
 0x32f   : > { %v2163_v4 = vsel %vm286_vm0, %v2143_v60, 0.0 }
 0x330   : > { %v2164_v19 = vadd.f32 %v2163_v4, %v2162_v16 }
 0x335   : > { %v2759_v52 = vpop.f32.mrf.mxu1 }
 0x337   : > { %v2760_v58 = vpop.f32.mrf.mxu1 }
 0x338   : > { %v2761_v61 = vadd.f32 %v2760_v58, %v2759_v52 }
 0x339   : > { %v2762_v63 = vpop.f32.mrf.mxu1 }
 0x33a   : > { %v2083_v1 = vadd.f32 %v2761_v61, %v2492_v34 }
 0x33b   : > { %v2763_v3 = vpop.f32.mrf.mxu1 }
 0x33c   : > { %v2148_v9 = vadd.f32 %v2793_v33, %v2083_v1  ;;  %v2764_v11 = vadd.f32 %v2763_v3, %v2762_v63  ;;  %v2183_v33 = vld [vmem:[%s3743_s6] sm:$0x3] }
 0x33e   : > { %v2165_v17 = vsel %vm286_vm0, %v2148_v9, 0.0  ;;  %v2086_v18 = vadd.f32 %v2764_v11, %v2492_v34 }
 0x33f   : > { %v2166_v21 = vadd.f32 %v2165_v17, %v2164_v19 }
 0x340   : > { %v2151_v20 = vadd.f32 %v2794_v48, %v2086_v18 }
 0x342   : > { %v2167_v22 = vsel %vm286_vm0, %v2151_v20, 0.0 }
 0x343   : > { %v2168_v23 = vadd.f32 %v2167_v22, %v2166_v21 }
 0x345   : > { %v2169_v24 = vrot.slane %v2168_v23, 4 }
 0x347   : > { %v2170_v8 = vadd.f32 %v2169_v24, %v2168_v23 }
 0x349   : > { %v2171_v25 = vrot.slane %v2170_v8, 2 }
 0x34b   : > { %v2172_v26 = vadd.f32 %v2171_v25, %v2170_v8 }
 0x34d   : > { %v2173_v27 = vrot.slane %v2172_v26, 1 }
 0x34f   : > { %v2174_v28 = vadd.f32 %v2173_v27, %v2172_v26 }
 0x351   : > { %v2176_v30 = vmul.f32 0.015625, %v2174_v28 }
 0x353   : > { %v2178_v31 = vmul.f32 %v2177_v29, %v2176_v30 }
 0x355   : > { %v2179_v32 = vsel %vm288_vm1, %v2178_v31, 0.0 }
 0x356   : > { %2180 = vadd.xlane.f32.xlu0 %v2179_v32 }
 0x3df   : > { %v2181_v34 = vpop.xlane.xlu0 %2180 }
 0x3e0   : > { %v2182_v35 = vmax.f32 %v2181_v34, 0.0 }
 0x3e2   : > { %v2184_v36 = vmul.f32 %v2183_v33, %v2182_v35 }
 0x3e4   : > { %v2185_v37 = vsel %vm288_vm1, %v2184_v36, 0.0 }
 0x3e5   : > { %v2186_v38 = vrot.slane %v2185_v37, 4 }
 0x3e7   : > { %v2187_v39 = vadd.f32 %v2186_v38, %v2185_v37 }
 0x3e9   : > { %v2188_v40 = vrot.slane %v2187_v39, 2 }
 0x3eb   : > { %v2189_v41 = vadd.f32 %v2188_v40, %v2187_v39 }
 0x3ed   : > { %v2190_v43 = vrot.slane %v2189_v41, 1 }
 0x3ef   : > { %v2191_v44 = vadd.f32 %v2190_v43, %v2189_v41 }
 0x3f1   : > { %v2527_v47 = vmul.f32 -1.442695, %v2191_v44 }
 0x3f3   : > { %2904 = vpow2.f32 %v2527_v47 }
 0x400   : > { %v2905_v48 = vpop.eup %2904 }
 0x401   : > { %v2195_v49 = vadd.f32 1.0, %v2905_v48 }
 0x403   : > { %2906 = vrcp.f32 %v2195_v49 }
 0x410   : > { %v2907_v51 = vpop.eup %2906 }
 0x411   : > { %v2198_v52 = vmul.f32 %v2907_v51, %v3642_v45  ;;  %v2199_v53 = vmul.f32 %v2907_v51, %v3640_v42  ;;  %v2200_v56 = vmul.f32 %v2907_v51, %v3644_v46  ;;  %v2201_v55 = vmul.f32 %v2907_v51, %v2135_v50 }
 0x412   : > { %v2202_v57 = vmul.f32 %v2907_v51, %v2140_v54  ;;  %v2203_v58 = vmul.f32 %v2907_v51, %v2143_v60  ;;  %v2204_v59 = vmul.f32 %v2907_v51, %v2148_v9  ;;  %v2205_v61 = vmul.f32 %v2907_v51, %v2151_v20 }
 0x413   : > { %v2206_v62 = vadd.f32 %v2198_v52, %v3122_v5  ;;  %v2207_v63 = vadd.f32 %v2199_v53, %v3124_v6  ;;  %v2208_v0 = vadd.f32 %v2200_v56, %v3126_v7  ;;  %v2209_v45 = vadd.f32 %v2201_v55, %v3134_v10 }
 0x414   : > { %v2210_v42 = vadd.f32 %v2202_v57, %v3138_v12  ;;  %v2211_v46 = vadd.f32 %v2203_v58, %v3140_v13  ;;  %v2212_v50 = vadd.f32 %v2204_v59, %v3142_v14  ;;  %v2213_v54 = vadd.f32 %v2205_v61, %v3150_v15 }
 0x415   : > { %v2214_v60 = vmax.f32 %v2206_v62, 0.0  ;;  %v2215_v1 = vmax.f32 %v2207_v63, 0.0  ;;  %v2216_v2 = vmax.f32 %v2208_v0, 0.0  ;;  %v2217_v3 = vmax.f32 %v2209_v45, 0.0 }
 0x416   : > { %v2218_v5 = vmax.f32 %v2210_v42, 0.0  ;;  %v2219_v6 = vmax.f32 %v2211_v46, 0.0  ;;  %v2220_v7 = vmax.f32 %v2212_v50, 0.0  ;;  %v2221_v10 = vmax.f32 %v2213_v54, 0.0 }
 0x417   : > { %2222 = vst.msk [vmem:[%s271_s19] sm:$0xff] %vm286_vm0, %v2214_v60  ;;  %2223 = vst.msk [vmem:[%s271_s19 + $0x8] sm:$0xff] %vm286_vm0, %v2215_v1 }
 0x418   : > { %2224 = vst.msk [vmem:[%s271_s19 + $0x10] sm:$0xff] %vm286_vm0, %v2216_v2  ;;  %2225 = vst.msk [vmem:[%s271_s19 + $0x18] sm:$0xff] %vm286_vm0, %v2217_v3 }
 0x419   : > { %2226 = vst.msk [vmem:[%s271_s19 + $0x20] sm:$0xff] %vm286_vm0, %v2218_v5  ;;  %2227 = vst.msk [vmem:[%s271_s19 + $0x28] sm:$0xff] %vm286_vm0, %v2219_v6 }
 0x41a   : > { %2228 = vst.msk [vmem:[%s271_s19 + $0x30] sm:$0xff] %vm286_vm0, %v2220_v7  ;;  %2229 = vst.msk [vmem:[%s271_s19 + $0x38] sm:$0xff] %vm286_vm0, %v2221_v10 }
 0x41b   : > { %2921 = shalt.err (!%p2918_p3)
}
 0x41c   : > { %s2922_s13 = scalar_lea.hbm %s3683_s23, 1024  ;;  %s2926_s16 = scalar_lea.hbm %s3744_s7, 2048 }
 0x41d   : > { %p2923_p4 = scmp.ne.s32.totalorder %s3683_s23, %s2922_s13  ;;  %p2927_p9 = scmp.lt.s32.totalorder %s3683_s23, %s3744_s7 }
 0x41e   : > { %p2928_p10 = scmp.lt.s32.totalorder %s2926_s16, %s2922_s13 }
 0x41f   : > { %p2924_p7 = pnand %p2923_p4, %p3055_p5 }
 0x420   : > { %p2929_p11 = por %p2928_p10, %p2927_p9 }
 0x421   : > { %p2925_p8 = pneg %p2924_p7 }
 0x423   : > { %p2930_p12 = pnand %p2929_p11, %p2925_p8 }
 0x425   : > { %2933 = shalt.err (!%p2930_p12)
}
 0x426   : > { %s2975_s28 = smov 128   ;;  %s2976_s22 = smov 8  }
 0x427   : > { %2795 = dma.vmem_to_hbm [thread:$0]  (%p3055_p5), %s3685_s20, 1024, %s3683_s23, %s3697_s29, %s2975_s28, %s2975_s28, %s2976_s22  }
 0x428 PF: > { %p2801_p13 = scmp.ge.s32.totalorder %s2968_s27, 2  ;;  %s2259_s9 = sand.u32 1, %s2956_s24  }
 0x429   : > { %s2260_s21 = scalar_lea.sflag [#allocation7], %s2259_s9 }
 0x42a   : > { %p2798_p0 = pnand %p2801_p13, %p3059_p6 }
 0x42c   : > { %p2799_p1 = pneg %p2798_p0 }
 0x42e   : > { %2951 = dma.done.wait (%p2799_p1), %s2260_s21, 1024  }
 0x42f   : > { %2953 = vsyncadd (%p2799_p1), %s2260_s21, 4294966272  ;;  %p17_p2 = scmp.ge.s32.totalorder %s3042_s30, 4   ;;  %s3747_s24 = smov %s2960_s25 }
 0x430   : > { %s3748_s25 = smov %s2964_s26  ;;  %s3749_s26 = smov %s3053_s10 }
 0x431   : > { %s3750_s27 = smov %s3042_s30  ;;  %19 = sbr.rel (!%p17_p2) target bundleno = 3 (0x3), region = 87 }
 0x436   :  { %2265 = vsyncpa [#allocation7], 1 }
 0x437   :  { %2267 = vsyncpa [#allocation7 + $0x1], 1 }

</bundles_post_ra>
